<compile_context>
chip_gen: v5e
topology: v5e:2x2
jax: 0.10.0
libtpu: 0.0.40
codegen_flags: <defaults>
</compile_context>

<pallas_src>
import jax
import jax.numpy as jnp
from jax.experimental import pallas as pl
from jax.experimental.pallas import tpu as pltpu


# --------------------------------------------------------------------------
# Pallas kernels
# --------------------------------------------------------------------------
def _matmul_bias_relu_kernel(p_ref, w_ref, b_ref, o_ref):
    # p_ref: (tm, K) bf16, w_ref: (K, Cout) bf16, b_ref: (1, Cout) f32
    acc = jnp.dot(p_ref[...], w_ref[...], preferred_element_type=jnp.float32)
    acc = acc + b_ref[...]
    o_ref[...] = jnp.maximum(acc, 0.0)                      # fused ReLU


def _dual_matmul_bias_kernel(p_ref, x_ref, w2_ref, wsc_ref, b_ref, o_ref):
    # residual (pooled c2 patches @ w2) + shortcut (pooled x @ w_sc) + biases
    acc = jnp.dot(p_ref[...], w2_ref[...], preferred_element_type=jnp.float32)
    acc = acc + jnp.dot(x_ref[...], wsc_ref[...],
                        preferred_element_type=jnp.float32)
    o_ref[...] = acc + b_ref[...]


def _pick_tile(m, target=512):
    for t in (target, 256, 128, 64, 32, 16, 8):
        if t <= m and m % t == 0:
            return t
    return m


def matmul_bias_relu(patches, w, b, *, tm):
    M, K = patches.shape
    Cout = w.shape[1]
    return pl.pallas_call(
        _matmul_bias_relu_kernel,
        out_shape=jax.ShapeDtypeStruct((M, Cout), jnp.float32),
        grid=(M // tm,),
        in_specs=[
            pl.BlockSpec((tm, K), lambda i: (i, 0)),
            pl.BlockSpec((K, Cout), lambda i: (0, 0)),
            pl.BlockSpec((1, Cout), lambda i: (0, 0)),
        ],
        out_specs=pl.BlockSpec((tm, Cout), lambda i: (i, 0)),
        compiler_params=pltpu.CompilerParams(
            dimension_semantics=("parallel",)),
    )(patches, w, b)


def dual_matmul_bias(p2, xp, w2, wsc, b, *, tm):
    M, K2 = p2.shape
    Cin = xp.shape[1]
    Cout = w2.shape[1]
    return pl.pallas_call(
        _dual_matmul_bias_kernel,
        out_shape=jax.ShapeDtypeStruct((M, Cout), jnp.float32),
        grid=(M // tm,),
        in_specs=[
            pl.BlockSpec((tm, K2), lambda i: (i, 0)),
            pl.BlockSpec((tm, Cin), lambda i: (i, 0)),
            pl.BlockSpec((K2, Cout), lambda i: (0, 0)),
            pl.BlockSpec((Cin, Cout), lambda i: (0, 0)),
            pl.BlockSpec((1, Cout), lambda i: (0, 0)),
        ],
        out_specs=pl.BlockSpec((tm, Cout), lambda i: (i, 0)),
        compiler_params=pltpu.CompilerParams(
            dimension_semantics=("parallel",)),
    )(p2, xp, w2, wsc, b)


# --------------------------------------------------------------------------
# XLA glue: im2col patches, 2x2 average pooling (linear layout prep only)
# --------------------------------------------------------------------------
def _im2col3x3(x_nhwc):
    """(N,H,W,C) -> (N,H,W,9*C) patches, column order (dy, dx, c)."""
    N, H, W, C = x_nhwc.shape
    xp = jnp.pad(x_nhwc, ((0, 0), (1, 1), (1, 1), (0, 0)))
    cols = [xp[:, dy:dy + H, dx:dx + W, :] for dy in range(3) for dx in range(3)]
    return jnp.concatenate(cols, axis=-1)


def _avgpool2(t):
    """2x2 average pool over the spatial dims of an (N,H,W,F) tensor."""
    N, H, W, F = t.shape
    return t.reshape(N, H // 2, 2, W // 2, 2, F).mean(axis=(2, 4))


# --------------------------------------------------------------------------
# OptimizedDisBlock forward
# --------------------------------------------------------------------------
def optimized_dis_block_forward(x_nchw, params):
    x = jnp.transpose(x_nchw, (0, 2, 3, 1)).astype(jnp.float32)   # NCHW -> NHWC
    N, H, W, Cin = x.shape
    Cout = params['c1_b'].shape[0]
    H2, W2 = H // 2, W // 2

    # ---- c1 (3x3, pad 1) + ReLU: single im2col matmul, fused epilogue ----
    p1 = _im2col3x3(x).reshape(N * H * W, 9 * Cin).astype(jnp.bfloat16)
    w1 = params['c1_w'].reshape(9 * Cin, Cout).astype(jnp.bfloat16)
    h1 = matmul_bias_relu(p1, w1, params['c1_b'].reshape(1, Cout),
                          tm=_pick_tile(N * H * W, 512))
    h1 = h1.reshape(N, H, W, Cout)

    # ---- AvgPool(c2(h1)) + c_sc(AvgPool(x)), fused into one kernel ----
    # AvgPool2d(2) is linear: pool(conv(h)) == (pooled im2col patches) @ w.
    p2 = _avgpool2(_im2col3x3(h1)).reshape(N * H2 * W2, 9 * Cout)
    p2 = p2.astype(jnp.bfloat16)
    xp = _avgpool2(x).reshape(N * H2 * W2, Cin).astype(jnp.bfloat16)
    w2 = params['c2_w'].reshape(9 * Cout, Cout).astype(jnp.bfloat16)
    wsc = params['c_sc_w'].reshape(Cin, Cout).astype(jnp.bfloat16)
    bias = (params['c2_b'] + params['c_sc_b']).reshape(1, Cout)
    out = dual_matmul_bias(p2, xp, w2, wsc, bias,
                           tm=_pick_tile(N * H2 * W2, 256))
    out = out.reshape(N, H2, W2, Cout)
    return jnp.transpose(out, (0, 3, 1, 2))                        # -> NCHW


# --------------------------------------------------------------------------
# Pure-JAX reference (exact module semantics, f32) for a sanity check
# --------------------------------------------------------------------------
def _conv_ref(x, w_hwio, b, pad):
    w_oihw = jnp.transpose(w_hwio, (3, 2, 0, 1))
    y = jax.lax.conv_general_dilated(
        x, w_oihw, window_strides=(1, 1), padding=((pad, pad), (pad, pad)),
        dimension_numbers=('NCHW', 'OIHW', 'NCHW'))
    return y + b.reshape(1, -1, 1, 1)


def _pool_ref(x):
    N, C, H, W = x.shape
    return x.reshape(N, C, H // 2, 2, W // 2, 2).mean(axis=(3, 5))


def reference_forward(x, p):
    h = jnp.maximum(_conv_ref(x, p['c1_w'], p['c1_b'], 1), 0.0)
    res = _pool_ref(_conv_ref(h, p['c2_w'], p['c2_b'], 1))
    sc = _conv_ref(_pool_ref(x), p['c_sc_w'], p['c_sc_b'], 0)
    return res + sc


# --------------------------------------------------------------------------
# Deterministic synthetic params (shapes follow the PyTorch module, HWIO)
# --------------------------------------------------------------------------
def init_params(key, in_ch, out_ch):
    keys = jax.random.split(key, 6)

    def init(k, shape, fan_in):
        return jax.random.normal(k, shape, jnp.float32) / jnp.sqrt(fan_in)

    return {
        'c1_w': init(keys[0], (3, 3, in_ch, out_ch), 9 * in_ch),
        'c1_b': init(keys[1], (out_ch,), 9 * in_ch),
        'c2_w': init(keys[2], (3, 3, out_ch, out_ch), 9 * out_ch),
        'c2_b': init(keys[3], (out_ch,), 9 * out_ch),
        'c_sc_w': init(keys[4], (1, 1, in_ch, out_ch), in_ch),
        'c_sc_b': init(keys[5], (out_ch,), in_ch),
    }


if __name__ == "__main__":
    key = jax.random.PRNGKey(0)
    pkey, xkey = jax.random.split(key)
    in_ch, out_ch = 3, 64                      # typical first discriminator block
    params = init_params(pkey, in_ch, out_ch)
    x = jax.random.normal(xkey, (2, in_ch, 32, 32), dtype=jnp.float32)

    out = jax.block_until_ready(jax.jit(optimized_dis_block_forward)(x, params))
    assert out.shape == (2, out_ch, 16, 16) and out.dtype == jnp.float32

    ref = jax.block_until_ready(jax.jit(reference_forward)(x, params))
    max_err = float(jnp.max(jnp.abs(out - ref)))
    assert max_err < 0.2, f"max abs err too large: {max_err}"

    print("KERNEL_OK")
</pallas_src>

<mosaic_0001>
module attributes {stable_mosaic.version = 11 : i64} {
  func.func @_matmul_bias_relu_kernel(%arg0: i32, %arg1: memref<512x27xbf16, #tpu.memory_space<vmem>>, %arg2: memref<27x64xbf16, #tpu.memory_space<vmem>>, %arg3: memref<1x64xf32, #tpu.memory_space<vmem>>, %arg4: memref<512x64xf32, #tpu.memory_space<vmem>>) attributes {dimension_semantics = [#tpu.dimension_semantics<parallel>], iteration_bounds = array<i64: 4>, scalar_prefetch = 0 : i64, scratch_operands = 0 : i64, tpu.core_type = #tpu.core_type<tc>, window_params = [{transform_indices = @transform_0, window_bounds = array<i64: 512, 27>}, {pipeline_mode = #tpu.pipeline_mode<synchronous>, transform_indices = @transform_1, window_bounds = array<i64: 27, 64>}, {pipeline_mode = #tpu.pipeline_mode<synchronous>, transform_indices = @transform_2, window_bounds = array<i64: 1, 64>}, {transform_indices = @transform_3, window_bounds = array<i64: 512, 64>}]} {
    %c0 = arith.constant 0 : index
    %c0_0 = arith.constant 0 : index
    %0 = vector.load %arg1[%c0, %c0_0] : memref<512x27xbf16, #tpu.memory_space<vmem>>, vector<512x27xbf16>
    %c0_1 = arith.constant 0 : index
    %c0_2 = arith.constant 0 : index
    %1 = vector.load %arg2[%c0_1, %c0_2] : memref<27x64xbf16, #tpu.memory_space<vmem>>, vector<27x64xbf16>
    %cst = arith.constant dense<0.000000e+00> : vector<512x64xf32>
    %2 = tpu.matmul %0, %1, %cst {dimension_numbers = #tpu.dot_dimension_numbers<[1], [0], [0], [1], [0, 0, 1, 1], [], []>} : vector<512x27xbf16>, vector<27x64xbf16>, vector<512x64xf32> -> vector<512x64xf32>
    %c0_3 = arith.constant 0 : index
    %c0_4 = arith.constant 0 : index
    %3 = vector.load %arg3[%c0_3, %c0_4] : memref<1x64xf32, #tpu.memory_space<vmem>>, vector<1x64xf32>
    %4 = vector.broadcast %3 : vector<1x64xf32> to vector<512x64xf32>
    %5 = arith.addf %2, %4 : vector<512x64xf32>
    %cst_5 = arith.constant 0.000000e+00 : f32
    %6 = vector.broadcast %cst_5 : f32 to vector<512x64xf32>
    %7 = arith.maximumf %5, %6 : vector<512x64xf32>
    %c0_6 = arith.constant 0 : index
    %c0_7 = arith.constant 0 : index
    %8 = vector.load %arg4[%c0_6, %c0_7] : memref<512x64xf32, #tpu.memory_space<vmem>>, vector<512x64xf32>
    tpu.vector_store %arg4[%c0_6, %c0_7], %7 {strides = array<i32>} : memref<512x64xf32, #tpu.memory_space<vmem>>, vector<512x64xf32>,
    return
  }
  func.func @transform_0(%arg0: i32) -> (i32, i32) {
    %c0_i32 = arith.constant 0 : i32
    %c0_i32_0 = arith.constant 0 : i32
    return %arg0, %c0_i32 : i32, i32
  }
  func.func @transform_1(%arg0: i32) -> (i32, i32) {
    %c0_i32 = arith.constant 0 : i32
    %c0_i32_0 = arith.constant 0 : i32
    %c0_i32_1 = arith.constant 0 : i32
    return %c0_i32, %c0_i32_0 : i32, i32
  }
  func.func @transform_2(%arg0: i32) -> (i32, i32) {
    %c0_i32 = arith.constant 0 : i32
    %c0_i32_0 = arith.constant 0 : i32
    %c0_i32_1 = arith.constant 0 : i32
    return %c0_i32, %c0_i32_0 : i32, i32
  }
  func.func @transform_3(%arg0: i32) -> (i32, i32) {
    %c0_i32 = arith.constant 0 : i32
    %c0_i32_0 = arith.constant 0 : i32
    return %arg0, %c0_i32 : i32, i32
  }
}

module attributes {stable_mosaic.version = 11 : i64} {
  func.func @_dual_matmul_bias_kernel(%arg0: i32, %arg1: memref<256x576xbf16, #tpu.memory_space<vmem>>, %arg2: memref<256x3xbf16, #tpu.memory_space<vmem>>, %arg3: memref<576x64xbf16, #tpu.memory_space<vmem>>, %arg4: memref<3x64xbf16, #tpu.memory_space<vmem>>, %arg5: memref<1x64xf32, #tpu.memory_space<vmem>>, %arg6: memref<256x64xf32, #tpu.memory_space<vmem>>) attributes {dimension_semantics = [#tpu.dimension_semantics<parallel>], iteration_bounds = array<i64: 2>, scalar_prefetch = 0 : i64, scratch_operands = 0 : i64, tpu.core_type = #tpu.core_type<tc>, window_params = [{transform_indices = @transform_0, window_bounds = array<i64: 256, 576>}, {transform_indices = @transform_1, window_bounds = array<i64: 256, 3>}, {pipeline_mode = #tpu.pipeline_mode<synchronous>, transform_indices = @transform_2, window_bounds = array<i64: 576, 64>}, {pipeline_mode = #tpu.pipeline_mode<synchronous>, transform_indices = @transform_3, window_bounds = array<i64: 3, 64>}, {pipeline_mode = #tpu.pipeline_mode<synchronous>, transform_indices = @transform_4, window_bounds = array<i64: 1, 64>}, {transform_indices = @transform_5, window_bounds = array<i64: 256, 64>}]} {
    %c0 = arith.constant 0 : index
    %c0_0 = arith.constant 0 : index
    %0 = vector.load %arg1[%c0, %c0_0] : memref<256x576xbf16, #tpu.memory_space<vmem>>, vector<256x576xbf16>
    %c0_1 = arith.constant 0 : index
    %c0_2 = arith.constant 0 : index
    %1 = vector.load %arg3[%c0_1, %c0_2] : memref<576x64xbf16, #tpu.memory_space<vmem>>, vector<576x64xbf16>
    %cst = arith.constant dense<0.000000e+00> : vector<256x64xf32>
    %2 = tpu.matmul %0, %1, %cst {dimension_numbers = #tpu.dot_dimension_numbers<[1], [0], [0], [1], [0, 0, 1, 1], [], []>} : vector<256x576xbf16>, vector<576x64xbf16>, vector<256x64xf32> -> vector<256x64xf32>
    %c0_3 = arith.constant 0 : index
    %c0_4 = arith.constant 0 : index
    %3 = vector.load %arg2[%c0_3, %c0_4] : memref<256x3xbf16, #tpu.memory_space<vmem>>, vector<256x3xbf16>
    %c0_5 = arith.constant 0 : index
    %c0_6 = arith.constant 0 : index
    %4 = vector.load %arg4[%c0_5, %c0_6] : memref<3x64xbf16, #tpu.memory_space<vmem>>, vector<3x64xbf16>
    %cst_7 = arith.constant dense<0.000000e+00> : vector<256x64xf32>
    %5 = tpu.matmul %3, %4, %cst_7 {dimension_numbers = #tpu.dot_dimension_numbers<[1], [0], [0], [1], [0, 0, 1, 1], [], []>} : vector<256x3xbf16>, vector<3x64xbf16>, vector<256x64xf32> -> vector<256x64xf32>
    %6 = arith.addf %2, %5 : vector<256x64xf32>
    %c0_8 = arith.constant 0 : index
    %c0_9 = arith.constant 0 : index
    %7 = vector.load %arg5[%c0_8, %c0_9] : memref<1x64xf32, #tpu.memory_space<vmem>>, vector<1x64xf32>
    %8 = vector.broadcast %7 : vector<1x64xf32> to vector<256x64xf32>
    %9 = arith.addf %6, %8 : vector<256x64xf32>
    %c0_10 = arith.constant 0 : index
    %c0_11 = arith.constant 0 : index
    %10 = vector.load %arg6[%c0_10, %c0_11] : memref<256x64xf32, #tpu.memory_space<vmem>>, vector<256x64xf32>
    tpu.vector_store %arg6[%c0_10, %c0_11], %9 {strides = array<i32>} : memref<256x64xf32, #tpu.memory_space<vmem>>, vector<256x64xf32>,
    return
  }
  func.func @transform_0(%arg0: i32) -> (i32, i32) {
    %c0_i32 = arith.constant 0 : i32
    %c0_i32_0 = arith.constant 0 : i32
    return %arg0, %c0_i32 : i32, i32
  }
  func.func @transform_1(%arg0: i32) -> (i32, i32) {
    %c0_i32 = arith.constant 0 : i32
    %c0_i32_0 = arith.constant 0 : i32
    return %arg0, %c0_i32 : i32, i32
  }
  func.func @transform_2(%arg0: i32) -> (i32, i32) {
    %c0_i32 = arith.constant 0 : i32
    %c0_i32_0 = arith.constant 0 : i32
    %c0_i32_1 = arith.constant 0 : i32
    return %c0_i32, %c0_i32_0 : i32, i32
  }
  func.func @transform_3(%arg0: i32) -> (i32, i32) {
    %c0_i32 = arith.constant 0 : i32
    %c0_i32_0 = arith.constant 0 : i32
    %c0_i32_1 = arith.constant 0 : i32
    return %c0_i32, %c0_i32_0 : i32, i32
  }
  func.func @transform_4(%arg0: i32) -> (i32, i32) {
    %c0_i32 = arith.constant 0 : i32
    %c0_i32_0 = arith.constant 0 : i32
    %c0_i32_1 = arith.constant 0 : i32
    return %c0_i32, %c0_i32_0 : i32, i32
  }
  func.func @transform_5(%arg0: i32) -> (i32, i32) {
    %c0_i32 = arith.constant 0 : i32
    %c0_i32_0 = arith.constant 0 : i32
    return %arg0, %c0_i32 : i32, i32
  }
}

</mosaic_0001>

<bundles_post_ra>
// kernel: optimized_dis_block_forward.2
= control target key start
LH: loop header
LB: loop body
LE: loop exit
PB: predicated region body
PF: predicated region fallthrough
CT: control target
= control target key end

     0   :  { %s1134_s12 = smov 0   ;;  %s1429_s0 = inlined_call_operand.vmem [shape: bf16[2048,27], index: 0, kind: input, shape index: {}]   ;;  %s1430_s1 = inlined_call_operand.vmem [shape: bf16[27,64], index: 1, kind: input, shape index: {}]   ;;  %s1431_s2 = inlined_call_operand.vmem [shape: f32[1,64], index: 2, kind: input, shape index: {}]   ;;  %s1432_s3 = inlined_call_operand.vmem [shape: f32[2048,64], index: 3, kind: output, shape index: {}]  }
   0x1 LB: > { %s876_s13 = sadd.s32 4294967295, %s1111_s12   ;;  %p880_p0 = scmp.ge.s32.totalorder %s1111_s12, 1  ;;  %s1111_s12 = sphi %s1134_s12, %s13_s12  }
   0x2   : > { %p138_p1 = scmp.lt.s32.totalorder %s1111_s12, 5 }
   0x4   : > { %p139_p2 = pnand %p880_p0, %p138_p1 }
   0x5   : > { %s881_s18 = sshll.u32 (!%p139_p2), %s876_s13, 6 }
   0x6   : > { %142 = sbr.rel (%p139_p2) target bundleno = 283 (0x11b), region = 32  ;;  %p163_p3 = scmp.lt.s32.totalorder (!%p139_p2), %s881_s18, 255 }
   0xb   : > { %v1019_v0 = vld [vmem:[%s1430_s1 + $0x8] sm:$0xf]  ;;  %v1088_v1 = vld [vmem:[%s1430_s1 + $0x8] sm:$0x30]  ;;  %vm515_vm0 = vcmask 1044480   ;;  %vm516_vm1 = vcmask 1045504  }
   0xc   : > { %v1020_v2 = vor.u32 %v1088_v1, %v1019_v0  ;;  %v1113_v3 = vmov 65535   ;;  %s1434_s18 = smov (!%p163_p3, %s881_s18), 255  ;;  %v1087_v7 = vld [vmem:[%s1430_s1] sm:$0xff]  ;;  %vm418_vm2 = vcmask 220160   ;;  %vm755_vm3 = vcmask 523264  }
   0xd   : > { %v517_v4 = vsel %vm515_vm0, 4294967295, %v1113_v3  ;;  %s882_s21 = sshll.u32 %s1434_s18, 2  ;;  %v1226_v40 = vld [vmem:[%s1431_s2] ss:$0 sm:$0xff]  ;;  %s884_s27 = sshll.u32 %s1434_s18, 3 }
   0xe   : > { %v518_v5 = vsel %vm516_vm1, %v517_v4, 0  ;;  %s1157_s24 = scalar_lea.vmem %s1429_s0, %s882_s21  ;;  %s1234_s30 = scalar_lea.vmem %s1432_s3, %s884_s27 }
   0xf   : > { %v520_v6 = vand.u32 %v1020_v2, %v518_v5  ;;  %v1055_v8 = vld [vmem:[%s1157_s24] sm:$0xff]  ;;  %v1056_v12 = vld [vmem:[%s1157_s24 + $0x8] sm:$0xff]  ;;  %v1057_v16 = vld [vmem:[%s1157_s24 + $0x10] sm:$0xff] }
  0x10   : > { %v1063_v9 = vld [vmem:[%s1157_s24 + $0x40] sm:$0xff]  ;;  %v1064_v13 = vld [vmem:[%s1157_s24 + $0x48] sm:$0xff]  ;;  %v1065_v17 = vld [vmem:[%s1157_s24 + $0x50] sm:$0xff] }
  0x11   : > { %528 = vmatpush.bf16.msra.mxu0 %v520_v6  ;;  %1089 = vmatpush.bf16.msra.mxu1 %v520_v6  ;;  %v1071_v10 = vld [vmem:[%s1157_s24 + $0x80] sm:$0xff]  ;;  %v1072_v14 = vld [vmem:[%s1157_s24 + $0x88] sm:$0xff]  ;;  %v1073_v18 = vld [vmem:[%s1157_s24 + $0x90] sm:$0xff] }
  0x12   : > { %1090 = vmatpush.bf16.msra.mxu2 %v520_v6  ;;  %1091 = vmatpush.bf16.msra.mxu3 %v520_v6  ;;  %v1079_v11 = vld [vmem:[%s1157_s24 + $0xc0] sm:$0xff]  ;;  %v1080_v15 = vld [vmem:[%s1157_s24 + $0xc8] sm:$0xff]  ;;  %v1081_v19 = vld [vmem:[%s1157_s24 + $0xd0] sm:$0xff] }
  0x13   : > { %v1058_v20 = vld [vmem:[%s1157_s24 + $0x18] sm:$0xff]  ;;  %v1059_v24 = vld [vmem:[%s1157_s24 + $0x20] sm:$0xff]  ;;  %v1060_v28 = vld [vmem:[%s1157_s24 + $0x28] sm:$0xff] }
  0x14   : > { %v1066_v21 = vld [vmem:[%s1157_s24 + $0x58] sm:$0xff]  ;;  %v1067_v25 = vld [vmem:[%s1157_s24 + $0x60] sm:$0xff]  ;;  %v1068_v29 = vld [vmem:[%s1157_s24 + $0x68] sm:$0xff] }
  0x15   : > { %529 = vmatpush.bf16.msra.mxu0 %v1087_v7  ;;  %1092 = vmatpush.bf16.msra.mxu1 %v1087_v7  ;;  %v1074_v22 = vld [vmem:[%s1157_s24 + $0x98] sm:$0xff]  ;;  %v1075_v26 = vld [vmem:[%s1157_s24 + $0xa0] sm:$0xff]  ;;  %v1076_v30 = vld [vmem:[%s1157_s24 + $0xa8] sm:$0xff] }
  0x16   : > { %1093 = vmatpush.bf16.msra.mxu2 %v1087_v7  ;;  %1094 = vmatpush.bf16.msra.mxu3 %v1087_v7  ;;  %v1082_v23 = vld [vmem:[%s1157_s24 + $0xd8] sm:$0xff]  ;;  %v1083_v27 = vld [vmem:[%s1157_s24 + $0xe0] sm:$0xff]  ;;  %v1084_v31 = vld [vmem:[%s1157_s24 + $0xe8] sm:$0xff] }
  0x17   : > { %v1061_v32 = vld [vmem:[%s1157_s24 + $0x30] sm:$0xff]  ;;  %v1062_v36 = vld [vmem:[%s1157_s24 + $0x38] sm:$0xff] }
  0x18   : > { %1021 = vmatmul.msk.bf16.vlgmr.msra.gmra.mxu0 %vm418_vm2, %v1055_v8  ;;  %1029 = vmatmul.msk.bf16.vlgmr.msra.gmra.mxu1 %vm418_vm2, %v1063_v9  ;;  %v1069_v33 = vld [vmem:[%s1157_s24 + $0x70] sm:$0xff]  ;;  %v1070_v37 = vld [vmem:[%s1157_s24 + $0x78] sm:$0xff] }
  0x19   : > { %1037 = vmatmul.msk.bf16.vlgmr.msra.gmra.mxu2 %vm418_vm2, %v1071_v10  ;;  %1045 = vmatmul.msk.bf16.vlgmr.msra.gmra.mxu3 %vm418_vm2, %v1079_v11  ;;  %v1077_v34 = vld [vmem:[%s1157_s24 + $0xb0] sm:$0xff]  ;;  %v1078_v38 = vld [vmem:[%s1157_s24 + $0xb8] sm:$0xff] }
  0x1a   : > { %v1085_v35 = vld [vmem:[%s1157_s24 + $0xf0] sm:$0xff]  ;;  %v1086_v39 = vld [vmem:[%s1157_s24 + $0xf8] sm:$0xff] }
  0x28   : > { %1022 = vmatmul.msk.bf16.gmra.mxu0 %vm418_vm2, %v1056_v12  ;;  %1030 = vmatmul.msk.bf16.gmra.mxu1 %vm418_vm2, %v1064_v13 }
  0x29   : > { %1038 = vmatmul.msk.bf16.gmra.mxu2 %vm418_vm2, %v1072_v14  ;;  %1046 = vmatmul.msk.bf16.gmra.mxu3 %vm418_vm2, %v1080_v15 }
  0x38   : > { %1023 = vmatmul.msk.bf16.gmra.mxu0 %vm418_vm2, %v1057_v16  ;;  %1031 = vmatmul.msk.bf16.gmra.mxu1 %vm418_vm2, %v1065_v17 }
  0x39   : > { %1039 = vmatmul.msk.bf16.gmra.mxu2 %vm418_vm2, %v1073_v18  ;;  %1047 = vmatmul.msk.bf16.gmra.mxu3 %vm418_vm2, %v1081_v19 }
  0x48   : > { %1024 = vmatmul.msk.bf16.gmra.mxu0 %vm418_vm2, %v1058_v20  ;;  %1032 = vmatmul.msk.bf16.gmra.mxu1 %vm418_vm2, %v1066_v21 }
  0x49   : > { %1040 = vmatmul.msk.bf16.gmra.mxu2 %vm418_vm2, %v1074_v22  ;;  %1048 = vmatmul.msk.bf16.gmra.mxu3 %vm418_vm2, %v1082_v23 }
  0x58   : > { %1025 = vmatmul.msk.bf16.gmra.mxu0 %vm418_vm2, %v1059_v24  ;;  %1033 = vmatmul.msk.bf16.gmra.mxu1 %vm418_vm2, %v1067_v25 }
  0x59   : > { %1041 = vmatmul.msk.bf16.gmra.mxu2 %vm418_vm2, %v1075_v26  ;;  %1049 = vmatmul.msk.bf16.gmra.mxu3 %vm418_vm2, %v1083_v27 }
  0x68   : > { %1026 = vmatmul.msk.bf16.gmra.mxu0 %vm418_vm2, %v1060_v28  ;;  %1034 = vmatmul.msk.bf16.gmra.mxu1 %vm418_vm2, %v1068_v29 }
  0x69   : > { %1042 = vmatmul.msk.bf16.gmra.mxu2 %vm418_vm2, %v1076_v30  ;;  %1050 = vmatmul.msk.bf16.gmra.mxu3 %vm418_vm2, %v1084_v31 }
  0x78   : > { %1027 = vmatmul.msk.bf16.gmra.mxu0 %vm418_vm2, %v1061_v32  ;;  %1035 = vmatmul.msk.bf16.gmra.mxu1 %vm418_vm2, %v1069_v33 }
  0x79   : > { %1043 = vmatmul.msk.bf16.gmra.mxu2 %vm418_vm2, %v1077_v34  ;;  %1051 = vmatmul.msk.bf16.gmra.mxu3 %vm418_vm2, %v1085_v35 }
  0x88   : > { %1028 = vmatmul.msk.bf16.gmra.mxu0 %vm418_vm2, %v1062_v36  ;;  %1036 = vmatmul.msk.bf16.gmra.mxu1 %vm418_vm2, %v1070_v37 }
  0x89   : > { %1044 = vmatmul.msk.bf16.gmra.mxu2 %vm418_vm2, %v1078_v38  ;;  %1052 = vmatmul.msk.bf16.gmra.mxu3 %vm418_vm2, %v1086_v39 }
  0x95   : > { %v531_v41 = vpop.f32.mrf.mxu0  ;;  %v571_v42 = vpop.f32.mrf.mxu1 }
  0x96   : > { %v532_v43 = vadd.f32 %v1226_v40, %v531_v41  ;;  %v572_v44 = vadd.f32 %v1226_v40, %v571_v42 }
  0x98   : > { %v691_v45 = vmax.f32 %v532_v43, 0.0  ;;  %v707_v46 = vmax.f32 %v572_v44, 0.0 }
  0x9a   : > { %756 = vst.msk [vmem:[%s1234_s30] sm:$0xff] %vm755_vm3, %v691_v45 }
  0x9b   : > { %772 = vst.msk [vmem:[%s1234_s30 + $0x80] sm:$0xff] %vm755_vm3, %v707_v46 }
  0x9c   : > { %v611_v47 = vpop.f32.mrf.mxu2  ;;  %v651_v48 = vpop.f32.mrf.mxu3 }
  0x9d   : > { %v612_v49 = vadd.f32 %v1226_v40, %v611_v47  ;;  %v652_v50 = vadd.f32 %v1226_v40, %v651_v48  ;;  %v533_v51 = vpop.f32.mrf.mxu0  ;;  %v573_v52 = vpop.f32.mrf.mxu1 }
  0x9e   : > { %v534_v53 = vadd.f32 %v1226_v40, %v533_v51  ;;  %v574_v54 = vadd.f32 %v1226_v40, %v573_v52 }
  0x9f   : > { %v723_v55 = vmax.f32 %v612_v49, 0.0  ;;  %v739_v56 = vmax.f32 %v652_v50, 0.0 }
  0xa0   : > { %v692_v57 = vmax.f32 %v534_v53, 0.0  ;;  %v708_v58 = vmax.f32 %v574_v54, 0.0 }
  0xa1   : > { %788 = vst.msk [vmem:[%s1234_s30 + $0x100] sm:$0xff] %vm755_vm3, %v723_v55 }
  0xa2   : > { %804 = vst.msk [vmem:[%s1234_s30 + $0x180] sm:$0xff] %vm755_vm3, %v739_v56 }
  0xa3   : > { %757 = vst.msk [vmem:[%s1234_s30 + $0x8] sm:$0xff] %vm755_vm3, %v692_v57 }
  0xa4   : > { %773 = vst.msk [vmem:[%s1234_s30 + $0x88] sm:$0xff] %vm755_vm3, %v708_v58  ;;  %v613_v59 = vpop.f32.mrf.mxu2  ;;  %v653_v60 = vpop.f32.mrf.mxu3 }
  0xa5   : > { %v614_v61 = vadd.f32 %v1226_v40, %v613_v59  ;;  %v654_v62 = vadd.f32 %v1226_v40, %v653_v60  ;;  %v536_v63 = vpop.f32.mrf.mxu0  ;;  %v576_v0 = vpop.f32.mrf.mxu1 }
  0xa6   : > { %v537_v1 = vadd.f32 %v1226_v40, %v536_v63  ;;  %v577_v2 = vadd.f32 %v1226_v40, %v576_v0 }
  0xa7   : > { %v724_v3 = vmax.f32 %v614_v61, 0.0  ;;  %v740_v4 = vmax.f32 %v654_v62, 0.0 }
  0xa8   : > { %v693_v5 = vmax.f32 %v537_v1, 0.0  ;;  %v709_v6 = vmax.f32 %v577_v2, 0.0 }
  0xa9   : > { %789 = vst.msk [vmem:[%s1234_s30 + $0x108] sm:$0xff] %vm755_vm3, %v724_v3 }
  0xaa   : > { %805 = vst.msk [vmem:[%s1234_s30 + $0x188] sm:$0xff] %vm755_vm3, %v740_v4 }
  0xab   : > { %758 = vst.msk [vmem:[%s1234_s30 + $0x10] sm:$0xff] %vm755_vm3, %v693_v5 }
  0xac   : > { %774 = vst.msk [vmem:[%s1234_s30 + $0x90] sm:$0xff] %vm755_vm3, %v709_v6  ;;  %v616_v7 = vpop.f32.mrf.mxu2  ;;  %v656_v8 = vpop.f32.mrf.mxu3 }
  0xad   : > { %v617_v9 = vadd.f32 %v1226_v40, %v616_v7  ;;  %v657_v10 = vadd.f32 %v1226_v40, %v656_v8  ;;  %v538_v11 = vpop.f32.mrf.mxu0  ;;  %v578_v12 = vpop.f32.mrf.mxu1 }
  0xae   : > { %v539_v13 = vadd.f32 %v1226_v40, %v538_v11  ;;  %v579_v14 = vadd.f32 %v1226_v40, %v578_v12 }
  0xaf   : > { %v725_v15 = vmax.f32 %v617_v9, 0.0  ;;  %v741_v16 = vmax.f32 %v657_v10, 0.0 }
  0xb0   : > { %v694_v17 = vmax.f32 %v539_v13, 0.0  ;;  %v710_v18 = vmax.f32 %v579_v14, 0.0 }
  0xb1   : > { %790 = vst.msk [vmem:[%s1234_s30 + $0x110] sm:$0xff] %vm755_vm3, %v725_v15 }
  0xb2   : > { %806 = vst.msk [vmem:[%s1234_s30 + $0x190] sm:$0xff] %vm755_vm3, %v741_v16 }
  0xb3   : > { %759 = vst.msk [vmem:[%s1234_s30 + $0x18] sm:$0xff] %vm755_vm3, %v694_v17 }
  0xb4   : > { %775 = vst.msk [vmem:[%s1234_s30 + $0x98] sm:$0xff] %vm755_vm3, %v710_v18  ;;  %v618_v19 = vpop.f32.mrf.mxu2  ;;  %v658_v20 = vpop.f32.mrf.mxu3 }
  0xb5   : > { %v619_v21 = vadd.f32 %v1226_v40, %v618_v19  ;;  %v659_v22 = vadd.f32 %v1226_v40, %v658_v20  ;;  %v541_v23 = vpop.f32.mrf.mxu0  ;;  %v581_v24 = vpop.f32.mrf.mxu1 }
  0xb6   : > { %v542_v25 = vadd.f32 %v1226_v40, %v541_v23  ;;  %v582_v26 = vadd.f32 %v1226_v40, %v581_v24 }
  0xb7   : > { %v726_v27 = vmax.f32 %v619_v21, 0.0  ;;  %v742_v28 = vmax.f32 %v659_v22, 0.0 }
  0xb8   : > { %v695_v29 = vmax.f32 %v542_v25, 0.0  ;;  %v711_v30 = vmax.f32 %v582_v26, 0.0 }
  0xb9   : > { %791 = vst.msk [vmem:[%s1234_s30 + $0x118] sm:$0xff] %vm755_vm3, %v726_v27 }
  0xba   : > { %807 = vst.msk [vmem:[%s1234_s30 + $0x198] sm:$0xff] %vm755_vm3, %v742_v28 }
  0xbb   : > { %760 = vst.msk [vmem:[%s1234_s30 + $0x20] sm:$0xff] %vm755_vm3, %v695_v29 }
  0xbc   : > { %776 = vst.msk [vmem:[%s1234_s30 + $0xa0] sm:$0xff] %vm755_vm3, %v711_v30  ;;  %v621_v31 = vpop.f32.mrf.mxu2  ;;  %v661_v32 = vpop.f32.mrf.mxu3 }
  0xbd   : > { %v622_v33 = vadd.f32 %v1226_v40, %v621_v31  ;;  %v662_v34 = vadd.f32 %v1226_v40, %v661_v32  ;;  %v543_v35 = vpop.f32.mrf.mxu0  ;;  %v583_v36 = vpop.f32.mrf.mxu1 }
  0xbe   : > { %v544_v37 = vadd.f32 %v1226_v40, %v543_v35  ;;  %v584_v38 = vadd.f32 %v1226_v40, %v583_v36 }
  0xbf   : > { %v727_v39 = vmax.f32 %v622_v33, 0.0  ;;  %v743_v41 = vmax.f32 %v662_v34, 0.0 }
  0xc0   : > { %v696_v42 = vmax.f32 %v544_v37, 0.0  ;;  %v712_v43 = vmax.f32 %v584_v38, 0.0 }
  0xc1   : > { %792 = vst.msk [vmem:[%s1234_s30 + $0x120] sm:$0xff] %vm755_vm3, %v727_v39 }
  0xc2   : > { %808 = vst.msk [vmem:[%s1234_s30 + $0x1a0] sm:$0xff] %vm755_vm3, %v743_v41 }
  0xc3   : > { %761 = vst.msk [vmem:[%s1234_s30 + $0x28] sm:$0xff] %vm755_vm3, %v696_v42 }
  0xc4   : > { %777 = vst.msk [vmem:[%s1234_s30 + $0xa8] sm:$0xff] %vm755_vm3, %v712_v43  ;;  %v623_v44 = vpop.f32.mrf.mxu2  ;;  %v663_v45 = vpop.f32.mrf.mxu3 }
  0xc5   : > { %v624_v46 = vadd.f32 %v1226_v40, %v623_v44  ;;  %v664_v47 = vadd.f32 %v1226_v40, %v663_v45  ;;  %v546_v48 = vpop.f32.mrf.mxu0  ;;  %v586_v49 = vpop.f32.mrf.mxu1 }
  0xc6   : > { %v547_v50 = vadd.f32 %v1226_v40, %v546_v48  ;;  %v587_v51 = vadd.f32 %v1226_v40, %v586_v49 }
  0xc7   : > { %v728_v52 = vmax.f32 %v624_v46, 0.0  ;;  %v744_v53 = vmax.f32 %v664_v47, 0.0 }
  0xc8   : > { %v697_v54 = vmax.f32 %v547_v50, 0.0  ;;  %v713_v55 = vmax.f32 %v587_v51, 0.0 }
  0xc9   : > { %793 = vst.msk [vmem:[%s1234_s30 + $0x128] sm:$0xff] %vm755_vm3, %v728_v52 }
  0xca   : > { %809 = vst.msk [vmem:[%s1234_s30 + $0x1a8] sm:$0xff] %vm755_vm3, %v744_v53 }
  0xcb   : > { %762 = vst.msk [vmem:[%s1234_s30 + $0x30] sm:$0xff] %vm755_vm3, %v697_v54 }
  0xcc   : > { %778 = vst.msk [vmem:[%s1234_s30 + $0xb0] sm:$0xff] %vm755_vm3, %v713_v55  ;;  %v626_v56 = vpop.f32.mrf.mxu2  ;;  %v666_v57 = vpop.f32.mrf.mxu3 }
  0xcd   : > { %v627_v58 = vadd.f32 %v1226_v40, %v626_v56  ;;  %v667_v59 = vadd.f32 %v1226_v40, %v666_v57  ;;  %v548_v60 = vpop.f32.mrf.mxu0  ;;  %v588_v61 = vpop.f32.mrf.mxu1 }
  0xce   : > { %v549_v62 = vadd.f32 %v1226_v40, %v548_v60  ;;  %v589_v63 = vadd.f32 %v1226_v40, %v588_v61 }
  0xcf   : > { %v729_v0 = vmax.f32 %v627_v58, 0.0  ;;  %v745_v1 = vmax.f32 %v667_v59, 0.0 }
  0xd0   : > { %v698_v2 = vmax.f32 %v549_v62, 0.0  ;;  %v714_v3 = vmax.f32 %v589_v63, 0.0 }
  0xd1   : > { %794 = vst.msk [vmem:[%s1234_s30 + $0x130] sm:$0xff] %vm755_vm3, %v729_v0 }
  0xd2   : > { %810 = vst.msk [vmem:[%s1234_s30 + $0x1b0] sm:$0xff] %vm755_vm3, %v745_v1 }
  0xd3   : > { %763 = vst.msk [vmem:[%s1234_s30 + $0x38] sm:$0xff] %vm755_vm3, %v698_v2 }
  0xd4   : > { %779 = vst.msk [vmem:[%s1234_s30 + $0xb8] sm:$0xff] %vm755_vm3, %v714_v3  ;;  %v628_v4 = vpop.f32.mrf.mxu2  ;;  %v668_v5 = vpop.f32.mrf.mxu3 }
  0xd5   : > { %v629_v6 = vadd.f32 %v1226_v40, %v628_v4  ;;  %v669_v7 = vadd.f32 %v1226_v40, %v668_v5  ;;  %v551_v8 = vpop.f32.mrf.mxu0  ;;  %v591_v9 = vpop.f32.mrf.mxu1 }
  0xd6   : > { %v552_v10 = vadd.f32 %v1226_v40, %v551_v8  ;;  %v592_v11 = vadd.f32 %v1226_v40, %v591_v9 }
  0xd7   : > { %v730_v12 = vmax.f32 %v629_v6, 0.0  ;;  %v746_v13 = vmax.f32 %v669_v7, 0.0 }
  0xd8   : > { %v699_v14 = vmax.f32 %v552_v10, 0.0  ;;  %v715_v15 = vmax.f32 %v592_v11, 0.0 }
  0xd9   : > { %795 = vst.msk [vmem:[%s1234_s30 + $0x138] sm:$0xff] %vm755_vm3, %v730_v12 }
  0xda   : > { %811 = vst.msk [vmem:[%s1234_s30 + $0x1b8] sm:$0xff] %vm755_vm3, %v746_v13 }
  0xdb   : > { %764 = vst.msk [vmem:[%s1234_s30 + $0x40] sm:$0xff] %vm755_vm3, %v699_v14 }
  0xdc   : > { %780 = vst.msk [vmem:[%s1234_s30 + $0xc0] sm:$0xff] %vm755_vm3, %v715_v15  ;;  %v631_v16 = vpop.f32.mrf.mxu2  ;;  %v671_v17 = vpop.f32.mrf.mxu3 }
  0xdd   : > { %v632_v18 = vadd.f32 %v1226_v40, %v631_v16  ;;  %v672_v19 = vadd.f32 %v1226_v40, %v671_v17  ;;  %v553_v20 = vpop.f32.mrf.mxu0  ;;  %v593_v21 = vpop.f32.mrf.mxu1 }
  0xde   : > { %v554_v22 = vadd.f32 %v1226_v40, %v553_v20  ;;  %v594_v23 = vadd.f32 %v1226_v40, %v593_v21 }
  0xdf   : > { %v731_v24 = vmax.f32 %v632_v18, 0.0  ;;  %v747_v25 = vmax.f32 %v672_v19, 0.0 }
  0xe0   : > { %v700_v26 = vmax.f32 %v554_v22, 0.0  ;;  %v716_v27 = vmax.f32 %v594_v23, 0.0 }
  0xe1   : > { %796 = vst.msk [vmem:[%s1234_s30 + $0x140] sm:$0xff] %vm755_vm3, %v731_v24 }
  0xe2   : > { %812 = vst.msk [vmem:[%s1234_s30 + $0x1c0] sm:$0xff] %vm755_vm3, %v747_v25 }
  0xe3   : > { %765 = vst.msk [vmem:[%s1234_s30 + $0x48] sm:$0xff] %vm755_vm3, %v700_v26 }
  0xe4   : > { %781 = vst.msk [vmem:[%s1234_s30 + $0xc8] sm:$0xff] %vm755_vm3, %v716_v27  ;;  %v633_v28 = vpop.f32.mrf.mxu2  ;;  %v673_v29 = vpop.f32.mrf.mxu3 }
  0xe5   : > { %v634_v30 = vadd.f32 %v1226_v40, %v633_v28  ;;  %v674_v31 = vadd.f32 %v1226_v40, %v673_v29  ;;  %v556_v32 = vpop.f32.mrf.mxu0  ;;  %v596_v33 = vpop.f32.mrf.mxu1 }
  0xe6   : > { %v557_v34 = vadd.f32 %v1226_v40, %v556_v32  ;;  %v597_v35 = vadd.f32 %v1226_v40, %v596_v33 }
  0xe7   : > { %v732_v36 = vmax.f32 %v634_v30, 0.0  ;;  %v748_v37 = vmax.f32 %v674_v31, 0.0 }
  0xe8   : > { %v701_v38 = vmax.f32 %v557_v34, 0.0  ;;  %v717_v39 = vmax.f32 %v597_v35, 0.0 }
  0xe9   : > { %797 = vst.msk [vmem:[%s1234_s30 + $0x148] sm:$0xff] %vm755_vm3, %v732_v36 }
  0xea   : > { %813 = vst.msk [vmem:[%s1234_s30 + $0x1c8] sm:$0xff] %vm755_vm3, %v748_v37 }
  0xeb   : > { %766 = vst.msk [vmem:[%s1234_s30 + $0x50] sm:$0xff] %vm755_vm3, %v701_v38 }
  0xec   : > { %782 = vst.msk [vmem:[%s1234_s30 + $0xd0] sm:$0xff] %vm755_vm3, %v717_v39  ;;  %v636_v41 = vpop.f32.mrf.mxu2  ;;  %v676_v42 = vpop.f32.mrf.mxu3 }
  0xed   : > { %v637_v43 = vadd.f32 %v1226_v40, %v636_v41  ;;  %v677_v44 = vadd.f32 %v1226_v40, %v676_v42  ;;  %v558_v45 = vpop.f32.mrf.mxu0  ;;  %v598_v46 = vpop.f32.mrf.mxu1 }
  0xee   : > { %v559_v47 = vadd.f32 %v1226_v40, %v558_v45  ;;  %v599_v48 = vadd.f32 %v1226_v40, %v598_v46 }
  0xef   : > { %v733_v49 = vmax.f32 %v637_v43, 0.0  ;;  %v749_v50 = vmax.f32 %v677_v44, 0.0 }
  0xf0   : > { %v702_v51 = vmax.f32 %v559_v47, 0.0  ;;  %v718_v52 = vmax.f32 %v599_v48, 0.0 }
  0xf1   : > { %798 = vst.msk [vmem:[%s1234_s30 + $0x150] sm:$0xff] %vm755_vm3, %v733_v49 }
  0xf2   : > { %814 = vst.msk [vmem:[%s1234_s30 + $0x1d0] sm:$0xff] %vm755_vm3, %v749_v50 }
  0xf3   : > { %767 = vst.msk [vmem:[%s1234_s30 + $0x58] sm:$0xff] %vm755_vm3, %v702_v51 }
  0xf4   : > { %783 = vst.msk [vmem:[%s1234_s30 + $0xd8] sm:$0xff] %vm755_vm3, %v718_v52  ;;  %v638_v53 = vpop.f32.mrf.mxu2  ;;  %v678_v54 = vpop.f32.mrf.mxu3 }
  0xf5   : > { %v639_v55 = vadd.f32 %v1226_v40, %v638_v53  ;;  %v679_v56 = vadd.f32 %v1226_v40, %v678_v54  ;;  %v561_v57 = vpop.f32.mrf.mxu0  ;;  %v601_v58 = vpop.f32.mrf.mxu1 }
  0xf6   : > { %v562_v59 = vadd.f32 %v1226_v40, %v561_v57  ;;  %v602_v60 = vadd.f32 %v1226_v40, %v601_v58 }
  0xf7   : > { %v734_v61 = vmax.f32 %v639_v55, 0.0  ;;  %v750_v62 = vmax.f32 %v679_v56, 0.0 }
  0xf8   : > { %v703_v63 = vmax.f32 %v562_v59, 0.0  ;;  %v719_v0 = vmax.f32 %v602_v60, 0.0 }
  0xf9   : > { %799 = vst.msk [vmem:[%s1234_s30 + $0x158] sm:$0xff] %vm755_vm3, %v734_v61 }
  0xfa   : > { %815 = vst.msk [vmem:[%s1234_s30 + $0x1d8] sm:$0xff] %vm755_vm3, %v750_v62 }
  0xfb   : > { %768 = vst.msk [vmem:[%s1234_s30 + $0x60] sm:$0xff] %vm755_vm3, %v703_v63 }
  0xfc   : > { %784 = vst.msk [vmem:[%s1234_s30 + $0xe0] sm:$0xff] %vm755_vm3, %v719_v0  ;;  %v641_v1 = vpop.f32.mrf.mxu2  ;;  %v681_v2 = vpop.f32.mrf.mxu3 }
  0xfd   : > { %v642_v3 = vadd.f32 %v1226_v40, %v641_v1  ;;  %v682_v4 = vadd.f32 %v1226_v40, %v681_v2  ;;  %v563_v5 = vpop.f32.mrf.mxu0  ;;  %v603_v6 = vpop.f32.mrf.mxu1 }
  0xfe   : > { %v564_v7 = vadd.f32 %v1226_v40, %v563_v5  ;;  %v604_v8 = vadd.f32 %v1226_v40, %v603_v6 }
  0xff   : > { %v735_v9 = vmax.f32 %v642_v3, 0.0  ;;  %v751_v10 = vmax.f32 %v682_v4, 0.0 }
 0x100   : > { %v704_v11 = vmax.f32 %v564_v7, 0.0  ;;  %v720_v12 = vmax.f32 %v604_v8, 0.0 }
 0x101   : > { %800 = vst.msk [vmem:[%s1234_s30 + $0x160] sm:$0xff] %vm755_vm3, %v735_v9 }
 0x102   : > { %816 = vst.msk [vmem:[%s1234_s30 + $0x1e0] sm:$0xff] %vm755_vm3, %v751_v10 }
 0x103   : > { %769 = vst.msk [vmem:[%s1234_s30 + $0x68] sm:$0xff] %vm755_vm3, %v704_v11 }
 0x104   : > { %785 = vst.msk [vmem:[%s1234_s30 + $0xe8] sm:$0xff] %vm755_vm3, %v720_v12  ;;  %v643_v13 = vpop.f32.mrf.mxu2  ;;  %v683_v14 = vpop.f32.mrf.mxu3 }
 0x105   : > { %v644_v15 = vadd.f32 %v1226_v40, %v643_v13  ;;  %v684_v16 = vadd.f32 %v1226_v40, %v683_v14  ;;  %v566_v17 = vpop.f32.mrf.mxu0  ;;  %v606_v18 = vpop.f32.mrf.mxu1 }
 0x106   : > { %v567_v19 = vadd.f32 %v1226_v40, %v566_v17  ;;  %v607_v20 = vadd.f32 %v1226_v40, %v606_v18 }
 0x107   : > { %v736_v21 = vmax.f32 %v644_v15, 0.0  ;;  %v752_v22 = vmax.f32 %v684_v16, 0.0 }
 0x108   : > { %v705_v23 = vmax.f32 %v567_v19, 0.0  ;;  %v721_v24 = vmax.f32 %v607_v20, 0.0 }
 0x109   : > { %801 = vst.msk [vmem:[%s1234_s30 + $0x168] sm:$0xff] %vm755_vm3, %v736_v21 }
 0x10a   : > { %817 = vst.msk [vmem:[%s1234_s30 + $0x1e8] sm:$0xff] %vm755_vm3, %v752_v22 }
 0x10b   : > { %770 = vst.msk [vmem:[%s1234_s30 + $0x70] sm:$0xff] %vm755_vm3, %v705_v23 }
 0x10c   : > { %786 = vst.msk [vmem:[%s1234_s30 + $0xf0] sm:$0xff] %vm755_vm3, %v721_v24  ;;  %v646_v25 = vpop.f32.mrf.mxu2  ;;  %v686_v26 = vpop.f32.mrf.mxu3 }
 0x10d   : > { %v647_v27 = vadd.f32 %v1226_v40, %v646_v25  ;;  %v687_v28 = vadd.f32 %v1226_v40, %v686_v26  ;;  %v568_v29 = vpop.f32.mrf.mxu0  ;;  %v608_v30 = vpop.f32.mrf.mxu1 }
 0x10e   : > { %v569_v31 = vadd.f32 %v1226_v40, %v568_v29  ;;  %v609_v32 = vadd.f32 %v1226_v40, %v608_v30 }
 0x10f   : > { %v737_v33 = vmax.f32 %v647_v27, 0.0  ;;  %v753_v34 = vmax.f32 %v687_v28, 0.0 }
 0x110   : > { %v706_v35 = vmax.f32 %v569_v31, 0.0  ;;  %v722_v36 = vmax.f32 %v609_v32, 0.0 }
 0x111   : > { %802 = vst.msk [vmem:[%s1234_s30 + $0x170] sm:$0xff] %vm755_vm3, %v737_v33 }
 0x112   : > { %818 = vst.msk [vmem:[%s1234_s30 + $0x1f0] sm:$0xff] %vm755_vm3, %v753_v34 }
 0x113   : > { %771 = vst.msk [vmem:[%s1234_s30 + $0x78] sm:$0xff] %vm755_vm3, %v706_v35 }
 0x114   : > { %787 = vst.msk [vmem:[%s1234_s30 + $0xf8] sm:$0xff] %vm755_vm3, %v722_v36  ;;  %v648_v37 = vpop.f32.mrf.mxu2  ;;  %v688_v38 = vpop.f32.mrf.mxu3 }
 0x115   : > { %v649_v39 = vadd.f32 %v1226_v40, %v648_v37  ;;  %v689_v41 = vadd.f32 %v1226_v40, %v688_v38 }
 0x117   : > { %v738_v42 = vmax.f32 %v649_v39, 0.0  ;;  %v754_v43 = vmax.f32 %v689_v41, 0.0 }
 0x119   : > { %803 = vst.msk [vmem:[%s1234_s30 + $0x178] sm:$0xff] %vm755_vm3, %v738_v42 }
 0x11a   : > { %819 = vst.msk [vmem:[%s1234_s30 + $0x1f8] sm:$0xff] %vm755_vm3, %v754_v43 }
 0x11b PF: > { %s13_s12 = sadd.s32 1, %s1111_s12  }
 0x11c   : > { %p10_p4 = scmp.ge.s32.totalorder %s13_s12, 6  }
 0x11e   :  { %12 = sbr.rel (!%p10_p4) target bundleno = 1 (0x1), region = 62 }

// kernel: optimized_dis_block_forward.3
= control target key start
LH: loop header
LB: loop body
LE: loop exit
PB: predicated region body
PF: predicated region fallthrough
CT: control target
= control target key end

     0   :  { %10 = vsyncpa [#allocation3], 0  ;;  %s3493_s0 = inlined_call_operand.vmem [shape: bf16[512,576], index: 0, kind: input, shape index: {}]   ;;  %s3494_s1 = inlined_call_operand.vmem [shape: bf16[512,3], index: 1, kind: input, shape index: {}]   ;;  %s3495_s2 = inlined_call_operand.vmem [shape: bf16[576,64], index: 2, kind: input, shape index: {}]   ;;  %s3496_s3 = inlined_call_operand.vmem [shape: bf16[3,64], index: 3, kind: input, shape index: {}]   ;;  %s3497_s4 = inlined_call_operand.vmem [shape: f32[1,64], index: 4, kind: input, shape index: {}]   ;;  %s3498_s5 = inlined_call_operand.hbm [shape: f32[512,64], index: 5, kind: output, shape index: {}]  }
   0x1   :  { %12 = vsyncpa [#allocation3 + $0x1], 0  ;;  %s2803_s18 = smov 0   ;;  %s2805_s19 = smov 0  }
   0x2   :  { %s2807_s20 = smov 0   ;;  %s2809_s21 = smov 0  }
   0x3 LB: > { %s2824_s22 = sadd.s32 4294967295, %s2768_s21   ;;  %s1946_s23 = sadd.s32 4294967294, %s2768_s21   ;;  %s2768_s21 = sphi %s2809_s21, %s3504_s21   ;;  %s2764_s20 = sphi %s2807_s20, %s3503_s20   ;;  %s2760_s19 = sphi %s2805_s19, %s3502_s19   ;;  %s2756_s18 = sphi %s2803_s18, %s3501_s18  }
   0x4   : > { %s2828_s24 = sadd.s32 1, %s2768_s21   ;;  %s140_s25 = sadd.s32 1, %s2764_s20 }
   0x5   : > { %s137_s26 = ssub.s32 %s2768_s21, %s2828_s24  ;;  %p150_p0 = scmp.ne.s32.totalorder %s2764_s20, %s2760_s19 }
   0x6   : > { %p138_p1 = scmp.eq.s32.totalorder %s137_s26, 0  ;;  %p151_p2 = scmp.eq.s32.totalorder %s2824_s22, 1 }
   0x7   : > { %p156_p3 = scmp.ne.s32.totalorder %s2760_s19, %s2756_s18  ;;  %p157_p4 = scmp.eq.s32.totalorder %s1946_s23, 1 }
   0x8   : > { %s2839_s27 = scalar_select %p138_p1, %s2764_s20, %s140_s25  }
   0x9   : > { %p2841_p5 = por %p151_p2, %p150_p0  ;;  %p2845_p6 = por %p157_p4, %p156_p3 }
   0xa   : > { %p1949_p7 = scmp.ge.s32.totalorder %s2768_s21, 1  ;;  %p203_p8 = scmp.lt.s32.totalorder %s2768_s21, 3 }
   0xc   : > { %p204_p9 = pnand %p1949_p7, %p203_p8 }
   0xd   : > { %s1951_s9 = sshll.u32 (!%p204_p9), %s2824_s22, 5  ;;  %s2726_s15 = scalar_lea.hbm (!%p204_p9), %s3498_s5, 512 }
   0xe   : > { %207 = sbr.rel (%p204_p9) target bundleno = 574 (0x23e), region = 40  ;;  %p238_p10 = scmp.lt.s32.totalorder (!%p204_p9), %s1951_s9, 63 }
  0x13   : > { %v2607_v0 = vld [vmem:[%s3495_s2 + $0x38] sm:$0xff]  ;;  %v452_v1 = vld [vmem:[%s3496_s3] sm:$0x3]  ;;  %vm582_vm0 = vcmask 1040384   ;;  %vm583_vm1 = vcmask 1041408   ;;  %v2770_v2 = vmov 65535  }
  0x14   : > { %v584_v3 = vsel %vm582_vm0, 4294967295, %v2770_v2  ;;  %1343 = vmatpush.bf16.msra.mxu1 %v2607_v0  ;;  %2654 = vmatpush.bf16.msra.mxu2 %v2607_v0  ;;  %v2606_v5 = vld [vmem:[%s3495_s2 + $0x30] sm:$0xff]  ;;  %v2631_v7 = vld [vmem:[%s3495_s2 + $0xf8] sm:$0xff]  ;;  %s3506_s9 = smov (!%p238_p10, %s1951_s9), 63  ;;  %v2605_v8 = vld [vmem:[%s3495_s2 + $0x28] sm:$0xff]  ;;  %vm533_vm2 = vcmask 23552  }
  0x15   : > { %v585_v4 = vsel %vm583_vm1, %v584_v3, 0  ;;  %s1954_s14 = sshll.u32 %s3506_s9, 2  ;;  %v2604_v10 = vld [vmem:[%s3495_s2 + $0x20] sm:$0xff]  ;;  %v2630_v12 = vld [vmem:[%s3495_s2 + $0xf0] sm:$0xff]  ;;  %v2603_v13 = vld [vmem:[%s3495_s2 + $0x18] sm:$0xff]  ;;  %s2662_s11 = smul.u32 20, %s3506_s9 }
  0x16   : > { %v587_v6 = vand.u32 %v585_v4, %v452_v1  ;;  %s2873_s25 = scalar_lea.vmem %s3494_s1, %s1954_s14  ;;  %v2602_v14 = vld [vmem:[%s3495_s2 + $0x10] sm:$0xff]  ;;  %v2623_v15 = vld [vmem:[%s3495_s2 + $0xb8] sm:$0xff]  ;;  %v2601_v17 = vld [vmem:[%s3495_s2 + $0x8] sm:$0xff]  ;;  %vm1294_vm3 = vcmask 523264  }
  0x17   : > { %v2636_v9 = vld [vmem:[%s2873_s25] sm:$0xff]  ;;  %v2645_v11 = vld [vmem:[%s2873_s25 + $0x48] sm:$0xff]  ;;  %s2898_s23 = scalar_lea.vmem %s3493_s0, %s2662_s11  ;;  %v2646_v21 = vld [vmem:[%s2873_s25 + $0x50] sm:$0xff] }
  0x18   : > { %596 = vmatpush.bf16.msra.mxu0 %v587_v6  ;;  %2653 = vmatpush.bf16.msra.mxu3 %v587_v6  ;;  %v2637_v16 = vld [vmem:[%s2873_s25 + $0x8] sm:$0xff]  ;;  %v2600_v18 = vld [vmem:[%s3495_s2] sm:$0xff]  ;;  %v2522_v20 = vld [vmem:[%s2898_s23 + $0x10] sm:$0xf0] }
  0x19   : > { %1344 = vmatpush.bf16.msra.mxu1 %v2606_v5  ;;  %2655 = vmatpush.bf16.msra.mxu2 %v2606_v5  ;;  %v2037_v19 = vld [vmem:[%s2898_s23] sm:$0xf]  ;;  %v2629_v22 = vld [vmem:[%s3495_s2 + $0xe8] sm:$0xff]  ;;  %v2562_v24 = vld [vmem:[%s2898_s23 + $0x150] sm:$0xf0] }
  0x1a   : > { %v2197_v23 = vld [vmem:[%s2898_s23 + $0x140] sm:$0xf]  ;;  %v2635_v25 = vld [vmem:[%s3495_s2 + $0x118] sm:$0xff]  ;;  %v2038_v27 = vor.u32 %v2522_v20, %v2037_v19  ;;  %v2614_v29 = vld [vmem:[%s3495_s2 + $0x70] sm:$0xff] }
  0x1b   : > { %2019 = vmatmul.msk.bf16.vlgmr.msra.gmra.mxu0 %vm533_vm2, %v2636_v9  ;;  %2028 = vmatmul.msk.bf16.vlgmr.msra.gmra.mxu3 %vm533_vm2, %v2645_v11  ;;  %v2615_v26 = vld [vmem:[%s3495_s2 + $0x78] sm:$0xff]  ;;  %v2198_v28 = vor.u32 %v2562_v24, %v2197_v23  ;;  %v2622_v30 = vld [vmem:[%s3495_s2 + $0xb0] sm:$0xff]  ;;  %v2613_v31 = vld [vmem:[%s3495_s2 + $0x68] sm:$0xff] }
  0x1c   : > { %1610 = vmatpush.bf16.msrb.mxu0 %v2631_v7  ;;  %1521 = vmatpush.bf16.msrb.mxu3 %v2623_v15  ;;  %v2638_v32 = vld [vmem:[%s2873_s25 + $0x10] sm:$0xff]  ;;  %v2057_v33 = vld [vmem:[%s2898_s23 + $0x28] sm:$0xf]  ;;  %v2527_v34 = vld [vmem:[%s2898_s23 + $0x38] sm:$0xf0] }
  0x1d   : > { %1345 = vmatpush.bf16.msra.mxu1 %v2605_v8  ;;  %2656 = vmatpush.bf16.msra.mxu2 %v2605_v8  ;;  %v2647_v35 = vld [vmem:[%s2873_s25 + $0x58] sm:$0xff]  ;;  %v2634_v36 = vld [vmem:[%s3495_s2 + $0x110] sm:$0xff]  ;;  %v2621_v37 = vld [vmem:[%s3495_s2 + $0xa8] sm:$0xff]  ;;  %v2058_v40 = vor.u32 %v2527_v34, %v2057_v33 }
  0x1e   : > { %v2217_v38 = vld [vmem:[%s2898_s23 + $0x168] sm:$0xf]  ;;  %v2567_v39 = vld [vmem:[%s2898_s23 + $0x178] sm:$0xf0]  ;;  %v2612_v42 = vld [vmem:[%s3495_s2 + $0x60] sm:$0xff] }
  0x1f   : > { %v2218_v41 = vor.u32 %v2567_v39, %v2217_v38  ;;  %v2628_v43 = vld [vmem:[%s3495_s2 + $0xe0] sm:$0xff]  ;;  %v2639_v44 = vld [vmem:[%s2873_s25 + $0x18] sm:$0xff]  ;;  %v2077_v45 = vld [vmem:[%s2898_s23 + $0x50] sm:$0xf] }
  0x20   : > { %1611 = vmatpush.bf16.msrb.mxu0 %v2630_v12  ;;  %1522 = vmatpush.bf16.msrb.mxu3 %v2622_v30  ;;  %v2532_v46 = vld [vmem:[%s2898_s23 + $0x60] sm:$0xf0]  ;;  %v2237_v49 = vld [vmem:[%s2898_s23 + $0x190] sm:$0xf]  ;;  %v2611_v53 = vld [vmem:[%s3495_s2 + $0x58] sm:$0xff] }
  0x21   : > { %1346 = vmatpush.bf16.msra.mxu1 %v2604_v10  ;;  %2657 = vmatpush.bf16.msra.mxu2 %v2604_v10  ;;  %v2648_v47 = vld [vmem:[%s2873_s25 + $0x60] sm:$0xff]  ;;  %v2078_v51 = vor.u32 %v2532_v46, %v2077_v45  ;;  %v2627_v54 = vld [vmem:[%s3495_s2 + $0xd8] sm:$0xff]  ;;  %v2537_v57 = vld [vmem:[%s2898_s23 + $0x88] sm:$0xf0] }
  0x22   : > { %v2620_v48 = vld [vmem:[%s3495_s2 + $0xa0] sm:$0xff]  ;;  %v2097_v56 = vld [vmem:[%s2898_s23 + $0x78] sm:$0xf]  ;;  %v2649_v58 = vld [vmem:[%s2873_s25 + $0x68] sm:$0xff] }
  0x23   : > { %v2572_v50 = vld [vmem:[%s2898_s23 + $0x1a0] sm:$0xf0]  ;;  %v2619_v59 = vld [vmem:[%s3495_s2 + $0x98] sm:$0xff]  ;;  %v2633_v60 = vld [vmem:[%s3495_s2 + $0x108] sm:$0xff]  ;;  %v2098_v63 = vor.u32 %v2537_v57, %v2097_v56 }
  0x24   : > { %1612 = vmatpush.bf16.msrb.mxu0 %v2629_v22  ;;  %1523 = vmatpush.bf16.msrb.mxu3 %v2621_v37  ;;  %v2238_v52 = vor.u32 %v2572_v50, %v2237_v49  ;;  %v2640_v55 = vld [vmem:[%s2873_s25 + $0x20] sm:$0xff]  ;;  %v2257_v61 = vld [vmem:[%s2898_s23 + $0x1b8] sm:$0xf]  ;;  %v2577_v62 = vld [vmem:[%s2898_s23 + $0x1c8] sm:$0xf0] }
  0x25   : > { %1347 = vmatpush.bf16.msra.mxu1 %v2603_v13  ;;  %2658 = vmatpush.bf16.msra.mxu2 %v2603_v13  ;;  %v2258_v0 = vor.u32 %v2577_v62, %v2257_v61  ;;  %v2610_v1 = vld [vmem:[%s3495_s2 + $0x50] sm:$0xff]  ;;  %v2641_v3 = vld [vmem:[%s2873_s25 + $0x28] sm:$0xff]  ;;  %v2117_v4 = vld [vmem:[%s2898_s23 + $0xa0] sm:$0xf] }
  0x26   : > { %v2626_v2 = vld [vmem:[%s3495_s2 + $0xd0] sm:$0xff]  ;;  %v2277_v8 = vld [vmem:[%s2898_s23 + $0x1e0] sm:$0xf]  ;;  %v2609_v12 = vld [vmem:[%s3495_s2 + $0x48] sm:$0xff] }
  0x27   : > { %v2542_v5 = vld [vmem:[%s2898_s23 + $0xb0] sm:$0xf0]  ;;  %v2625_v15 = vld [vmem:[%s3495_s2 + $0xc8] sm:$0xff]  ;;  %v2632_v19 = vld [vmem:[%s3495_s2 + $0x100] sm:$0xff] }
  0x28   : > { %1613 = vmatpush.bf16.msrb.mxu0 %v2628_v43  ;;  %1524 = vmatpush.bf16.msrb.mxu3 %v2620_v48  ;;  %v2618_v6 = vld [vmem:[%s3495_s2 + $0x90] sm:$0xff]  ;;  %v2118_v10 = vor.u32 %v2542_v5, %v2117_v4  ;;  %v2297_v20 = vld [vmem:[%s2898_s23 + $0x208] sm:$0xf]  ;;  %v2608_v24 = vld [vmem:[%s3495_s2 + $0x40] sm:$0xff] }
  0x29   : > { %1348 = vmatpush.bf16.msra.mxu1 %v2602_v14  ;;  %2659 = vmatpush.bf16.msra.mxu2 %v2602_v14  ;;  %v2650_v7 = vld [vmem:[%s2873_s25 + $0x70] sm:$0xff]  ;;  %v2617_v14 = vld [vmem:[%s3495_s2 + $0x88] sm:$0xff]  ;;  %v2592_v34 = vld [vmem:[%s2898_s23 + $0x240] sm:$0xf0] }
  0x2a   : > { %v2582_v9 = vld [vmem:[%s2898_s23 + $0x1f0] sm:$0xf0]  ;;  %v2317_v33 = vld [vmem:[%s2898_s23 + $0x230] sm:$0xf]  ;;  %v2644_v37 = vld [vmem:[%s2873_s25 + $0x40] sm:$0xff] }
  0x2b   : > { %2020 = vmatmul.msk.bf16.gmra.mxu0 %vm533_vm2, %v2637_v16  ;;  %2029 = vmatmul.msk.bf16.gmra.mxu3 %vm533_vm2, %v2646_v21  ;;  %v2278_v11 = vor.u32 %v2582_v9, %v2277_v8  ;;  %v2642_v13 = vld [vmem:[%s2873_s25 + $0x30] sm:$0xff]  ;;  %v2137_v16 = vld [vmem:[%s2898_s23 + $0xc8] sm:$0xf]  ;;  %v2587_v21 = vld [vmem:[%s2898_s23 + $0x218] sm:$0xf0] }
  0x2c   : > { %1614 = vmatpush.bf16.msrb.mxu0 %v2627_v54  ;;  %1525 = vmatpush.bf16.msrb.mxu3 %v2619_v59  ;;  %v2298_v23 = vor.u32 %v2587_v21, %v2297_v20  ;;  %v2065_v39 = vld [vmem:[%s2898_s23 + $0x30] sm:$0xf]  ;;  %v2557_v43 = vld [vmem:[%s2898_s23 + $0x128] sm:$0xf0]  ;;  %v2524_v59 = vld [vmem:[%s2898_s23 + $0x20] sm:$0xf0] }
  0x2d   : > { %1349 = vmatpush.bf16.msra.mxu1 %v2601_v17  ;;  %2660 = vmatpush.bf16.msra.mxu2 %v2601_v17  ;;  %v2547_v17 = vld [vmem:[%s2898_s23 + $0xd8] sm:$0xf0]  ;;  %v2597_v45 = vld [vmem:[%s2898_s23 + $0x268] sm:$0xf0]  ;;  %v2039_v61 = vld [vmem:[%s2898_s23 + $0x14] sm:$0xf0] }
  0x2e   : > { %v2138_v22 = vor.u32 %v2547_v17, %v2137_v16  ;;  %v2521_v50 = vld [vmem:[%s2898_s23 + $0xc] sm:$0xf]  ;;  %v2526_v4 = vld [vmem:[%s2898_s23 + $0x34] sm:$0xf]  ;;  %v2067_v5 = vld [vmem:[%s2898_s23 + $0x44] sm:$0xf0] }
  0x2f   : > { %v2533_v56 = vld [vmem:[%s2898_s23 + $0x68] sm:$0xf0]  ;;  %v2070_v8 = vor.u32 %v2526_v4, %v2067_v5 }
  0x30   : > { %1615 = vmatpush.bf16.msrb.mxu0 %v2626_v2  ;;  %1526 = vmatpush.bf16.msrb.mxu3 %v2618_v6  ;;  %v2529_v16 = vld [vmem:[%s2898_s23 + $0x48] sm:$0xf0] }
  0x31   : > { %1350 = vmatpush.bf16.msra.mxu1 %v2600_v18  ;;  %2661 = vmatpush.bf16.msra.mxu2 %v2600_v18  ;;  %v2651_v18 = vld [vmem:[%s2873_s25 + $0x78] sm:$0xff]  ;;  %v2525_v17 = vld [vmem:[%s2898_s23 + $0x2c] sm:$0xf] }
  0x34   : > { %1351 = vmatmul.bf16.vlgmr.msra.gmra.mxu1 %v2038_v27  ;;  %1391 = vmatmul.bf16.vlgmr.msra.gmra.mxu2 %v2198_v28  ;;  %v2624_v27 = vld [vmem:[%s3495_s2 + $0xc0] sm:$0xff]  ;;  %v2045_v28 = vld [vmem:[%s2898_s23 + $0x8] sm:$0xf] }
  0x35   : > { %1703 = vmatpush.bf16.msrb.mxu1 %v2635_v25  ;;  %1432 = vmatpush.bf16.msrb.mxu2 %v2615_v26  ;;  %v2616_v25 = vld [vmem:[%s3495_s2 + $0x80] sm:$0xff]  ;;  %v2643_v26 = vld [vmem:[%s2873_s25 + $0x38] sm:$0xff]  ;;  %s234_s25 = sand.u32 1, %s2760_s19  }
  0x36   : > { %1527 = vmatpush.bf16.msrb.mxu3 %v2617_v14  ;;  %1616 = vmatpush.bf16.msrb.mxu0 %v2625_v15  ;;  %v2073_v15 = vld [vmem:[%s2898_s23 + $0x38] sm:$0xf]  ;;  %s1950_s16 = sshll.u32 %s234_s25, 8  ;;  %s1857_s10 = scalar_lea.sflag [#allocation3], %s234_s25 }
  0x37   : > { %v2074_v20 = vor.u32 %v2529_v16, %v2073_v15  ;;  %v2127_v15 = vld [vmem:[%s2898_s23 + $0xbc] sm:$0xf0]  ;;  %s3247_s26 = scalar_lea.vmem [#allocation2], %s1950_s16 }
  0x38   : > { %s1869_s8 = sshll.u32 %s3247_s26, 4  ;;  %s1870_s8 = int_to_ptr.vmem [resolvable:$true] %s1869_s8 }
  0x39   : > { %1433 = vmatpush.bf16.msrb.mxu2 %v2614_v29  ;;  %1704 = vmatpush.bf16.msrb.mxu1 %v2634_v36  ;;  %v2523_v29 = vld [vmem:[%s2898_s23 + $0x18] sm:$0xf0]  ;;  %v2318_v36 = vor.u32 %v2592_v34, %v2317_v33 }
  0x3a   : > { %1528 = vmatpush.bf16.msrb.mxu3 %v2616_v25  ;;  %1617 = vmatpush.bf16.msrb.mxu0 %v2624_v27  ;;  %v2046_v30 = vor.u32 %v2523_v29, %v2045_v28  ;;  %v2087_v27 = vld [vmem:[%s2898_s23 + $0x6c] sm:$0xf0] }
  0x3b   : > { %2021 = vmatmul.msk.bf16.gmra.mxu0 %vm533_vm2, %v2638_v32  ;;  %2030 = vmatmul.msk.bf16.gmra.mxu3 %vm533_vm2, %v2647_v35  ;;  %v2552_v32 = vld [vmem:[%s2898_s23 + $0x100] sm:$0xf0] }
  0x3d   : > { %1434 = vmatpush.bf16.msrb.mxu2 %v2613_v31  ;;  %1705 = vmatpush.bf16.msrb.mxu1 %v2633_v60  ;;  %v2157_v31 = vld [vmem:[%s2898_s23 + $0xf0] sm:$0xf]  ;;  %v2520_v60 = vld [vmem:[%s2898_s23 + $0x4] sm:$0xf] }
  0x3e   : > { %v2158_v35 = vor.u32 %v2552_v32, %v2157_v31 }
  0x41   : > { %1435 = vmatpush.bf16.msrb.mxu2 %v2612_v42  ;;  %1706 = vmatpush.bf16.msrb.mxu1 %v2632_v19  ;;  %v2177_v42 = vld [vmem:[%s2898_s23 + $0x118] sm:$0xf] }
  0x42   : > { %v2178_v46 = vor.u32 %v2557_v43, %v2177_v42 }
  0x44   : > { %1356 = vmatmul.bf16.gmra.mxu1 %v2058_v40  ;;  %1396 = vmatmul.bf16.gmra.mxu2 %v2218_v41  ;;  %v2528_v40 = vld [vmem:[%s2898_s23 + $0x40] sm:$0xf0] }
  0x45   : > { %1436 = vmatpush.bf16.msrb.mxu2 %v2611_v53  ;;  %v2066_v41 = vor.u32 %v2528_v40, %v2065_v39  ;;  %v2534_v39 = vld [vmem:[%s2898_s23 + $0x70] sm:$0xf0] }
  0x46   : > { %v2530_v40 = vld [vmem:[%s2898_s23 + $0x54] sm:$0xf] }
  0x49   : > { %1437 = vmatpush.bf16.msrb.mxu2 %v2610_v1 }
  0x4b   : > { %2022 = vmatmul.msk.bf16.gmra.mxu0 %vm533_vm2, %v2639_v44  ;;  %2031 = vmatmul.msk.bf16.gmra.mxu3 %vm533_vm2, %v2648_v47  ;;  %v2337_v44 = vld [vmem:[%s2898_s23 + $0x258] sm:$0xf] }
  0x4c   : > { %v2338_v47 = vor.u32 %v2597_v45, %v2337_v44 }
  0x4d   : > { %1438 = vmatpush.bf16.msrb.mxu2 %v2609_v12  ;;  %v2105_v12 = vld [vmem:[%s2898_s23 + $0x80] sm:$0xf] }
  0x51   : > { %1439 = vmatpush.bf16.msrb.mxu2 %v2608_v24 }
  0x54   : > { %1361 = vmatmul.bf16.gmra.mxu1 %v2078_v51  ;;  %1401 = vmatmul.bf16.gmra.mxu2 %v2238_v52  ;;  %v2047_v51 = vld [vmem:[%s2898_s23 + $0x1c] sm:$0xf0] }
  0x55   : > { %v2050_v52 = vor.u32 %v2521_v50, %v2047_v51  ;;  %v2536_v50 = vld [vmem:[%s2898_s23 + $0x84] sm:$0xf]  ;;  %v2107_v51 = vld [vmem:[%s2898_s23 + $0x94] sm:$0xf0] }
  0x5b   : > { %2023 = vmatmul.msk.bf16.gmra.mxu0 %vm533_vm2, %v2640_v55  ;;  %2032 = vmatmul.msk.bf16.gmra.mxu3 %vm533_vm2, %v2649_v58  ;;  %v2085_v55 = vld [vmem:[%s2898_s23 + $0x58] sm:$0xf]  ;;  %v2053_v58 = vld [vmem:[%s2898_s23 + $0x10] sm:$0xf] }
  0x5c   : > { %v2086_v57 = vor.u32 %v2533_v56, %v2085_v55  ;;  %v2054_v62 = vor.u32 %v2524_v59, %v2053_v58  ;;  %v2110_v55 = vor.u32 %v2536_v50, %v2107_v51  ;;  %v2145_v59 = vld [vmem:[%s2898_s23 + $0xd0] sm:$0xf] }
  0x64   : > { %1366 = vmatmul.bf16.gmra.mxu1 %v2098_v63  ;;  %1406 = vmatmul.bf16.gmra.mxu2 %v2258_v0  ;;  %v2042_v0 = vor.u32 %v2520_v60, %v2039_v61  ;;  %v2548_v60 = vld [vmem:[%s2898_s23 + $0xe0] sm:$0xf0] }
  0x65   : > { %v2146_v61 = vor.u32 %v2548_v60, %v2145_v59  ;;  %v2153_v59 = vld [vmem:[%s2898_s23 + $0xd8] sm:$0xf]  ;;  %v2549_v60 = vld [vmem:[%s2898_s23 + $0xe8] sm:$0xf0] }
  0x6b   : > { %2024 = vmatmul.msk.bf16.gmra.mxu0 %vm533_vm2, %v2641_v3  ;;  %2033 = vmatmul.msk.bf16.gmra.mxu3 %vm533_vm2, %v2650_v7 }
  0x74   : > { %1371 = vmatmul.bf16.gmra.mxu1 %v2118_v10  ;;  %1411 = vmatmul.bf16.gmra.mxu2 %v2278_v11 }
  0x7b   : > { %2025 = vmatmul.msk.bf16.gmra.mxu0 %vm533_vm2, %v2642_v13  ;;  %2034 = vmatmul.msk.bf16.gmra.mxu3 %vm533_vm2, %v2651_v18  ;;  %v2538_v13 = vld [vmem:[%s2898_s23 + $0x90] sm:$0xf0]  ;;  %v2059_v18 = vld [vmem:[%s2898_s23 + $0x3c] sm:$0xf0] }
  0x7c   : > { %v2106_v14 = vor.u32 %v2538_v13, %v2105_v12 }
  0x84   : > { %1376 = vmatmul.bf16.gmra.mxu1 %v2138_v22  ;;  %1416 = vmatmul.bf16.gmra.mxu2 %v2298_v23  ;;  %v2062_v22 = vor.u32 %v2525_v17, %v2059_v18 }
  0x8b   : > { %2026 = vmatmul.msk.bf16.gmra.mxu0 %vm533_vm2, %v2643_v26  ;;  %1529 = vmatmul.bf16.vlgmr.msrb.gmra.mxu3 %v2046_v30  ;;  %v2531_v26 = vld [vmem:[%s2898_s23 + $0x5c] sm:$0xf] }
  0x8c   : > { %v2090_v31 = vor.u32 %v2531_v26, %v2087_v27  ;;  %v2553_v26 = vld [vmem:[%s2898_s23 + $0x108] sm:$0xf0] }
  0x94   : > { %1381 = vmatmul.bf16.gmra.mxu1 %v2158_v35  ;;  %1421 = vmatmul.bf16.gmra.mxu2 %v2318_v36  ;;  %v2125_v35 = vld [vmem:[%s2898_s23 + $0xa8] sm:$0xf]  ;;  %v2543_v36 = vld [vmem:[%s2898_s23 + $0xb8] sm:$0xf0] }
  0x98   : > { %v598_v38 = vpop.f32.mrf.mxu0 }
  0x9b   : > { %2027 = vmatmul.msk.bf16.gmra.mxu0 %vm533_vm2, %v2644_v37  ;;  %1534 = vmatmul.bf16.gmra.mxu3 %v2066_v41  ;;  %v2126_v37 = vor.u32 %v2543_v36, %v2125_v35  ;;  %v2079_v41 = vld [vmem:[%s2898_s23 + $0x64] sm:$0xf0] }
  0x9e   : > { %v643_v49 = vpop.f32.mrf.mxu3 }
  0xa0   : > { %v600_v48 = vpop.f32.mrf.mxu0 }
  0xa4   : > { %1386 = vmatmul.bf16.gmra.mxu1 %v2178_v46  ;;  %1426 = vmatmul.bf16.gmra.mxu2 %v2338_v47  ;;  %v2082_v46 = vor.u32 %v2530_v40, %v2079_v41 }
  0xa6   : > { %v3047_v54 = vpop.f32.mrf.mxu3 }
  0xa8   : > { %v603_v53 = vpop.f32.mrf.mxu0 }
  0xab   : > { %1618 = vmatmul.bf16.vlgmr.msrb.gmra.mxu0 %v2050_v52  ;;  %1539 = vmatmul.bf16.gmra.mxu3 %v2086_v57 }
  0xae   : > { %v648_v3 = vpop.f32.mrf.mxu3 }
  0xb0   : > { %v605_v1 = vpop.f32.mrf.mxu0 }
  0xb1   : > { %v1352_v63 = vpop.f32.mrf.mxu1 }
  0xb2   : > { %v3055_v2 = vadd.f32 %v1352_v63, %v598_v38  ;;  %v2093_v38 = vld [vmem:[%s2898_s23 + $0x60] sm:$0xf]  ;;  %v2539_v63 = vld [vmem:[%s2898_s23 + $0x98] sm:$0xf0] }
  0xb3   : > { %v2094_v43 = vor.u32 %v2534_v39, %v2093_v38 }
  0xb4   : > { %2499 = vmatmul.msk.bf16.vlgmr.msrb.gmra.mxu1 %vm1294_vm3, %v2054_v62  ;;  %1440 = vmatmul.bf16.vlgmr.msrb.gmra.mxu2 %v2042_v0  ;;  %v2113_v62 = vld [vmem:[%s2898_s23 + $0x88] sm:$0xf]  ;;  %v2535_v0 = vld [vmem:[%s2898_s23 + $0x7c] sm:$0xf] }
  0xb6   : > { %v3064_v11 = vpop.f32.mrf.mxu3 }
  0xb7   : > { %v3060_v6 = vpop.f32.mrf.mxu2 }
  0xb8   : > { %v608_v9 = vpop.f32.mrf.mxu0 }
  0xb9   : > { %v1354_v7 = vpop.f32.mrf.mxu1 }
  0xba   : > { %v3062_v10 = vadd.f32 %v1354_v7, %v600_v48 }
  0xbb   : > { %1623 = vmatmul.bf16.gmra.mxu0 %v2070_v8  ;;  %1544 = vmatmul.bf16.gmra.mxu3 %v2106_v14  ;;  %v2541_v14 = vld [vmem:[%s2898_s23 + $0xac] sm:$0xf] }
  0xbc   : > { %v2130_v18 = vor.u32 %v2541_v14, %v2127_v15  ;;  %v2167_v14 = vld [vmem:[%s2898_s23 + $0x10c] sm:$0xf0] }
  0xbe   : > { %v653_v25 = vpop.f32.mrf.mxu3 }
  0xbf   : > { %v3072_v19 = vpop.f32.mrf.mxu2 }
  0xc0   : > { %v610_v23 = vpop.f32.mrf.mxu0 }
  0xc1   : > { %v1357_v21 = vpop.f32.mrf.mxu1 }
  0xc2   : > { %v3074_v24 = vadd.f32 %v1357_v21, %v603_v53 }
  0xc4   : > { %2500 = vmatmul.msk.bf16.gmra.mxu1 %vm1294_vm3, %v2074_v20  ;;  %1445 = vmatmul.bf16.gmra.mxu2 %v2062_v22 }
  0xc6   : > { %v3083_v34 = vpop.f32.mrf.mxu3 }
  0xc7   : > { %v1397_v28 = vpop.f32.mrf.mxu2 }
  0xc8   : > { %v3079_v29 = vadd.f32 %v1397_v28, %v643_v49  ;;  %v613_v32 = vpop.f32.mrf.mxu0  ;;  %v2133_v28 = vld [vmem:[%s2898_s23 + $0xb0] sm:$0xf] }
  0xc9   : > { %v1359_v30 = vpop.f32.mrf.mxu1 }
  0xca   : > { %v3081_v33 = vadd.f32 %v1359_v30, %v605_v1  ;;  %v2099_v1 = vld [vmem:[%s2898_s23 + $0x8c] sm:$0xf0]  ;;  %v2544_v30 = vld [vmem:[%s2898_s23 + $0xc0] sm:$0xf0] }
  0xcb   : > { %1628 = vmatmul.bf16.gmra.mxu0 %v2090_v31  ;;  %1549 = vmatmul.bf16.gmra.mxu3 %v2126_v37  ;;  %v2102_v8 = vor.u32 %v2535_v0, %v2099_v1  ;;  %v2540_v31 = vld [vmem:[%s2898_s23 + $0xa4] sm:$0xf] }
  0xce   : > { %v658_v49 = vpop.f32.mrf.mxu3 }
  0xcf   : > { %v1399_v42 = vpop.f32.mrf.mxu2 }
  0xd0   : > { %v3092_v44 = vadd.f32 %v1399_v42, %v3047_v54  ;;  %v615_v47 = vpop.f32.mrf.mxu0  ;;  %v2546_v42 = vld [vmem:[%s2898_s23 + $0xd4] sm:$0xf] }
  0xd1   : > { %v1362_v45 = vpop.f32.mrf.mxu1 }
  0xd2   : > { %v3094_v48 = vadd.f32 %v1362_v45, %v608_v9 }
  0xd4   : > { %2501 = vmatmul.msk.bf16.gmra.mxu1 %vm1294_vm3, %v2094_v43  ;;  %1450 = vmatmul.bf16.gmra.mxu2 %v2082_v46  ;;  %v2147_v43 = vld [vmem:[%s2898_s23 + $0xe4] sm:$0xf0] }
  0xd6   : > { %v3103_v58 = vpop.f32.mrf.mxu3 }
  0xd7   : > { %v1402_v52 = vpop.f32.mrf.mxu2 }
  0xd8   : > { %v3099_v53 = vadd.f32 %v1402_v52, %v648_v3  ;;  %v618_v56 = vpop.f32.mrf.mxu0  ;;  %v2114_v3 = vor.u32 %v2539_v63, %v2113_v62  ;;  %v2139_v62 = vld [vmem:[%s2898_s23 + $0xdc] sm:$0xf0] }
  0xd9   : > { %v1364_v54 = vpop.f32.mrf.mxu1 }
  0xda   : > { %v3101_v57 = vadd.f32 %v1364_v54, %v610_v23  ;;  %v2165_v23 = vld [vmem:[%s2898_s23 + $0xf8] sm:$0xf]  ;;  %v2185_v54 = vld [vmem:[%s2898_s23 + $0x120] sm:$0xf] }
  0xdb   : > { %1633 = vmatmul.bf16.gmra.mxu0 %v2110_v55  ;;  %1554 = vmatmul.bf16.gmra.mxu3 %v2146_v61  ;;  %v2166_v27 = vor.u32 %v2553_v26, %v2165_v23  ;;  %v2558_v55 = vld [vmem:[%s2898_s23 + $0x130] sm:$0xf0]  ;;  %v2545_v61 = vld [vmem:[%s2898_s23 + $0xcc] sm:$0xf]  ;;  %v2563_v26 = vld [vmem:[%s2898_s23 + $0x158] sm:$0xf0] }
  0xde   : > { %v663_v13 = vpop.f32.mrf.mxu3 }
  0xdf   : > { %v1404_v4 = vpop.f32.mrf.mxu2 }
  0xe0   : > { %v3112_v5 = vadd.f32 %v1404_v4, %v3064_v11  ;;  %v620_v9 = vpop.f32.mrf.mxu0  ;;  %v2142_v4 = vor.u32 %v2545_v61, %v2139_v62  ;;  %v2225_v61 = vld [vmem:[%s2898_s23 + $0x170] sm:$0xf]  ;;  %v2568_v62 = vld [vmem:[%s2898_s23 + $0x180] sm:$0xf0] }
  0xe1   : > { %v1367_v7 = vpop.f32.mrf.mxu1 }
  0xe2   : > { %v3114_v12 = vadd.f32 %v1367_v7, %v613_v32  ;;  %v2119_v32 = vld [vmem:[%s2898_s23 + $0xb4] sm:$0xf0] }
  0xe3   : > { %v2122_v38 = vor.u32 %v2540_v31, %v2119_v32  ;;  %v2554_v31 = vld [vmem:[%s2898_s23 + $0x110] sm:$0xf0] }
  0xe4   : > { %2502 = vmatmul.msk.bf16.gmra.mxu1 %vm1294_vm3, %v2114_v3  ;;  %1455 = vmatmul.bf16.gmra.mxu2 %v2102_v8  ;;  %v2550_v32 = vld [vmem:[%s2898_s23 + $0xf4] sm:$0xf] }
  0xe6   : > { %v3123_v22 = vpop.f32.mrf.mxu3 }
  0xe7   : > { %v1407_v16 = vpop.f32.mrf.mxu2 }
  0xe8   : > { %v3119_v11 = vadd.f32 %v1407_v16, %v653_v25  ;;  %v623_v20 = vpop.f32.mrf.mxu0  ;;  %v2134_v25 = vor.u32 %v2544_v30, %v2133_v28  ;;  %v2173_v30 = vld [vmem:[%s2898_s23 + $0x100] sm:$0xf] }
  0xe9   : > { %v1369_v17 = vpop.f32.mrf.mxu1 }
  0xea   : > { %v3121_v21 = vadd.f32 %v1369_v17, %v615_v47  ;;  %v2150_v47 = vor.u32 %v2546_v42, %v2147_v43 }
  0xeb   : > { %1638 = vmatmul.bf16.gmra.mxu0 %v2130_v18  ;;  %1559 = vmatmul.bf16.gmra.mxu3 %v2166_v27 }
  0xee   : > { %v668_v41 = vpop.f32.mrf.mxu3 }
  0xef   : > { %v1409_v35 = vpop.f32.mrf.mxu2 }
  0xf0   : > { %v3132_v36 = vadd.f32 %v1409_v35, %v3083_v34  ;;  %v625_v39 = vpop.f32.mrf.mxu0  ;;  %v2159_v35 = vld [vmem:[%s2898_s23 + $0x104] sm:$0xf0] }
  0xf1   : > { %v1372_v37 = vpop.f32.mrf.mxu1 }
  0xf2   : > { %v3134_v40 = vadd.f32 %v1372_v37, %v618_v56  ;;  %v2186_v56 = vor.u32 %v2558_v55, %v2185_v54 }
  0xf4   : > { %2503 = vmatmul.msk.bf16.gmra.mxu1 %vm1294_vm3, %v2134_v25  ;;  %1460 = vmatmul.bf16.gmra.mxu2 %v2122_v38 }
  0xf6   : > { %v3143_v52 = vpop.f32.mrf.mxu3 }
  0xf7   : > { %v1412_v45 = vpop.f32.mrf.mxu2 }
  0xf8   : > { %v3139_v34 = vadd.f32 %v1412_v45, %v658_v49  ;;  %v628_v50 = vpop.f32.mrf.mxu0  ;;  %v2154_v49 = vor.u32 %v2549_v60, %v2153_v59 }
  0xf9   : > { %v1374_v46 = vpop.f32.mrf.mxu1 }
  0xfa   : > { %v3141_v51 = vadd.f32 %v1374_v46, %v620_v9  ;;  %v2551_v9 = vld [vmem:[%s2898_s23 + $0xfc] sm:$0xf]  ;;  %v2556_v46 = vld [vmem:[%s2898_s23 + $0x124] sm:$0xf] }
  0xfb   : > { %1643 = vmatmul.bf16.gmra.mxu0 %v2150_v47  ;;  %1564 = vmatmul.bf16.gmra.mxu3 %v2186_v56  ;;  %v2170_v17 = vor.u32 %v2551_v9, %v2167_v14  ;;  %v2187_v47 = vld [vmem:[%s2898_s23 + $0x134] sm:$0xf0]  ;;  %v2179_v9 = vld [vmem:[%s2898_s23 + $0x12c] sm:$0xf0] }
  0xfc   : > { %v2190_v56 = vor.u32 %v2556_v46, %v2187_v47  ;;  %v2213_v46 = vld [vmem:[%s2898_s23 + $0x150] sm:$0xf]  ;;  %v2564_v47 = vld [vmem:[%s2898_s23 + $0x160] sm:$0xf0] }
  0xfe   : > { %v673_v8 = vpop.f32.mrf.mxu3 }
  0xff   : > { %v1414_v63 = vpop.f32.mrf.mxu2 }
 0x100   : > { %v3152_v0 = vadd.f32 %v1414_v63, %v3103_v58  ;;  %v630_v3 = vpop.f32.mrf.mxu0  ;;  %v2193_v63 = vld [vmem:[%s2898_s23 + $0x128] sm:$0xf] }
 0x101   : > { %v1377_v1 = vpop.f32.mrf.mxu1 }
 0x102   : > { %v3154_v7 = vadd.f32 %v1377_v1, %v623_v20  ;;  %v2205_v20 = vld [vmem:[%s2898_s23 + $0x148] sm:$0xf]  ;;  %v2226_v1 = vor.u32 %v2568_v62, %v2225_v61  ;;  %v2214_v61 = vor.u32 %v2564_v47, %v2213_v46  ;;  %v2565_v47 = vld [vmem:[%s2898_s23 + $0x16c] sm:$0xf] }
 0x103   : > { %v2206_v28 = vor.u32 %v2563_v26, %v2205_v20 }
 0x104   : > { %2504 = vmatmul.msk.bf16.gmra.mxu1 %vm1294_vm3, %v2154_v49  ;;  %1465 = vmatmul.bf16.gmra.mxu2 %v2142_v4  ;;  %v2559_v49 = vld [vmem:[%s2898_s23 + $0x138] sm:$0xf0] }
 0x105   : > { %v2555_v4 = vld [vmem:[%s2898_s23 + $0x11c] sm:$0xf]  ;;  %v2194_v14 = vor.u32 %v2559_v49, %v2193_v63 }
 0x106   : > { %v3165_v27 = vpop.f32.mrf.mxu3 }
 0x107   : > { %v1417_v15 = vpop.f32.mrf.mxu2 }
 0x108   : > { %v3159_v58 = vadd.f32 %v1417_v15, %v663_v13  ;;  %v633_v18 = vpop.f32.mrf.mxu0  ;;  %v2174_v13 = vor.u32 %v2554_v31, %v2173_v30 }
 0x109   : > { %v1379_v16 = vpop.f32.mrf.mxu1 }
 0x10a   : > { %v3161_v23 = vadd.f32 %v1379_v16, %v625_v39  ;;  %v2162_v39 = vor.u32 %v2550_v32, %v2159_v35  ;;  %v2182_v16 = vor.u32 %v2555_v4, %v2179_v9  ;;  %v2566_v4 = vld [vmem:[%s2898_s23 + $0x174] sm:$0xf]  ;;  %v2227_v9 = vld [vmem:[%s2898_s23 + $0x184] sm:$0xf0] }
 0x10b   : > { %1648 = vmatmul.bf16.gmra.mxu0 %v2170_v17  ;;  %1569 = vmatmul.bf16.gmra.mxu3 %v2206_v28  ;;  %v2561_v28 = vld [vmem:[%s2898_s23 + $0x14c] sm:$0xf] }
 0x10e   : > { %v3176_v45 = vpop.f32.mrf.mxu3 }
 0x10f   : > { %v1419_v25 = vpop.f32.mrf.mxu2 }
 0x110   : > { %v3172_v37 = vadd.f32 %v1419_v25, %v3123_v22  ;;  %v635_v42 = vpop.f32.mrf.mxu0 }
 0x111   : > { %v1382_v38 = vpop.f32.mrf.mxu1 }
 0x112   : > { %v3174_v43 = vadd.f32 %v1382_v38, %v628_v50  ;;  %v2245_v38 = vld [vmem:[%s2898_s23 + $0x198] sm:$0xf] }
 0x114   : > { %2505 = vmatmul.msk.bf16.gmra.mxu1 %vm1294_vm3, %v2174_v13  ;;  %1470 = vmatmul.bf16.gmra.mxu2 %v2162_v39  ;;  %v2573_v39 = vld [vmem:[%s2898_s23 + $0x1a8] sm:$0xf0] }
 0x116   : > { %v3187_v60 = vpop.f32.mrf.mxu3 }
 0x117   : > { %v1422_v22 = vpop.f32.mrf.mxu2 }
 0x118   : > { %v3181_v54 = vadd.f32 %v1422_v22, %v668_v41  ;;  %v3183_v59 = vpop.f32.mrf.mxu0  ;;  %v2246_v22 = vor.u32 %v2573_v39, %v2245_v38  ;;  %v3239_v38 = vld [vmem:[%s3497_s4] ss:$0 sm:$0xff]  ;;  %v2569_v39 = vld [vmem:[%s2898_s23 + $0x188] sm:$0xf0] }
 0x119   : > { %v1384_v55 = vpop.f32.mrf.mxu1 }
 0x11a   : > { %v3185_v50 = vadd.f32 %v1384_v55, %v630_v3  ;;  %v2560_v55 = vld [vmem:[%s2898_s23 + $0x144] sm:$0xf] }
 0x11b   : > { %1653 = vmatmul.bf16.gmra.mxu0 %v2190_v56  ;;  %1574 = vmatmul.bf16.gmra.mxu3 %v2226_v1  ;;  %v2199_v56 = vld [vmem:[%s2898_s23 + $0x154] sm:$0xf0] }
 0x11c   : > { %v2202_v62 = vor.u32 %v2560_v55, %v2199_v56 }
 0x11e   : > { %v3202_v26 = vpop.f32.mrf.mxu3 }
 0x11f   : > { %v1424_v41 = vpop.f32.mrf.mxu2 }
 0x120   : > { %v3196_v15 = vadd.f32 %v1424_v41, %v3143_v52  ;;  %v3198_v17 = vpop.f32.mrf.mxu0  ;;  %v2207_v52 = vld [vmem:[%s2898_s23 + $0x15c] sm:$0xf0] }
 0x121   : > { %v1387_v3 = vpop.f32.mrf.mxu1  ;;  %v2210_v35 = vor.u32 %v2561_v28, %v2207_v52 }
 0x122   : > { %v3200_v20 = vadd.f32 %v1387_v3, %v633_v18  ;;  %v2230_v3 = vor.u32 %v2566_v4, %v2227_v9 }
 0x124   : > { %2506 = vmatmul.msk.bf16.gmra.mxu1 %vm1294_vm3, %v2194_v14  ;;  %1475 = vmatmul.bf16.gmra.mxu2 %v2182_v16 }
 0x126   : > { %v3211_v13 = vpop.f32.mrf.mxu3 }
 0x127   : > { %v1427_v30 = vpop.f32.mrf.mxu2 }
 0x128   : > { %v3207_v31 = vadd.f32 %v1427_v30, %v673_v8  ;;  %v1619_v18 = vpop.f32.mrf.mxu0  ;;  %v2265_v30 = vld [vmem:[%s2898_s23 + $0x1c0] sm:$0xf] }
 0x129   : > { %v1389_v32 = vpop.f32.mrf.mxu1 }
 0x12a   : > { %v3209_v25 = vadd.f32 %v1389_v32, %v635_v42  ;;  %v2578_v32 = vld [vmem:[%s2898_s23 + $0x1d0] sm:$0xf0] }
 0x12b   : > { %1658 = vmatmul.bf16.gmra.mxu0 %v2210_v35  ;;  %1579 = vmatmul.bf16.gmra.mxu3 %v2246_v22  ;;  %v2266_v46 = vor.u32 %v2578_v32, %v2265_v30  ;;  %v2219_v22 = vld [vmem:[%s2898_s23 + $0x17c] sm:$0xf0] }
 0x12e   : > { %v3222_v1 = vpop.f32.mrf.mxu3 }
 0x12f   : > { %v1429_v8 = vpop.f32.mrf.mxu2 }
 0x130   : > { %v3220_v42 = vadd.f32 %v1429_v8, %v3165_v27  ;;  %v1621_v49 = vpop.f32.mrf.mxu0 }
 0x131   : > { %v1708_v63 = vpop.f32.mrf.mxu1 }
 0x134   : > { %2507 = vmatmul.msk.bf16.gmra.mxu1 %vm1294_vm3, %v2214_v61  ;;  %1480 = vmatmul.bf16.gmra.mxu2 %v2202_v62  ;;  %v2222_v61 = vor.u32 %v2565_v47, %v2219_v22  ;;  %v2583_v47 = vld [vmem:[%s2898_s23 + $0x1f8] sm:$0xf0] }
 0x136   : > { %v3230_v52 = vpop.f32.mrf.mxu3 }
 0x137   : > { %v1441_v41 = vpop.f32.mrf.mxu2 }
 0x138   : > { %v1442_v27 = vadd.f32 %v1441_v41, %v3055_v2  ;;  %v1624_v16 = vpop.f32.mrf.mxu0  ;;  %v2233_v2 = vld [vmem:[%s2898_s23 + $0x178] sm:$0xf] }
 0x139   : > { %v1710_v14 = vpop.f32.mrf.mxu1  ;;  %v2234_v56 = vor.u32 %v2569_v39, %v2233_v2 }
 0x13a   : > { %v1531_v28 = vadd.f32 %v3176_v45, %v1442_v27  ;;  %v2247_v27 = vld [vmem:[%s2898_s23 + $0x1ac] sm:$0xf0] }
 0x13b   : > { %1663 = vmatmul.bf16.gmra.mxu0 %v2230_v3  ;;  %1584 = vmatmul.bf16.gmra.mxu3 %v2266_v46  ;;  %v2285_v46 = vld [vmem:[%s2898_s23 + $0x1e8] sm:$0xf] }
 0x13c   : > { %v1620_v35 = vadd.f32 %v1619_v18, %v1531_v28 }
 0x13e   : > { %v1709_v55 = vadd.f32 %v1708_v63, %v1620_v35  ;;  %v3252_v9 = vpop.f32.mrf.mxu3 }
 0x13f   : > { %v1443_v45 = vpop.f32.mrf.mxu2 }
 0x140   : > { %v1792_v8 = vadd.f32 %v3239_v38, %v1709_v55  ;;  %v1444_v18 = vadd.f32 %v1443_v45, %v3062_v10  ;;  %v1626_v4 = vpop.f32.mrf.mxu0  ;;  %v2571_v10 = vld [vmem:[%s2898_s23 + $0x19c] sm:$0xf]  ;;  %v2574_v55 = vld [vmem:[%s2898_s23 + $0x1b0] sm:$0xf0]  ;;  %v2286_v45 = vor.u32 %v2583_v47, %v2285_v46 }
 0x141   : > { %v1713_v62 = vpop.f32.mrf.mxu1  ;;  %v2250_v35 = vor.u32 %v2571_v10, %v2247_v27 }
 0x142   : > { %1824 = vst.msk [vmem:[%s3247_s26] sm:$0xff] %vm1294_vm3, %v1792_v8  ;;  %v1533_v63 = vadd.f32 %v3187_v60, %v1444_v18  ;;  %v2239_v8 = vld [vmem:[%s2898_s23 + $0x1a4] sm:$0xf0] }
 0x144   : > { %2508 = vmatmul.msk.bf16.gmra.mxu1 %vm1294_vm3, %v2234_v56  ;;  %v1622_v41 = vadd.f32 %v1621_v49, %v1533_v63  ;;  %1485 = vmatmul.bf16.gmra.mxu2 %v2222_v61  ;;  %v2570_v56 = vld [vmem:[%s2898_s23 + $0x194] sm:$0xf] }
 0x146   : > { %v1711_v3 = vadd.f32 %v1710_v14, %v1622_v41  ;;  %v3262_v39 = vpop.f32.mrf.mxu3  ;;  %v2253_v14 = vld [vmem:[%s2898_s23 + $0x1a0] sm:$0xf]  ;;  %v2242_v41 = vor.u32 %v2570_v56, %v2239_v8  ;;  %v2579_v56 = vld [vmem:[%s2898_s23 + $0x1d8] sm:$0xf0] }
 0x147   : > { %v1446_v28 = vpop.f32.mrf.mxu2  ;;  %v2254_v61 = vor.u32 %v2574_v55, %v2253_v14  ;;  %v2305_v14 = vld [vmem:[%s2898_s23 + $0x210] sm:$0xf]  ;;  %v2588_v55 = vld [vmem:[%s2898_s23 + $0x220] sm:$0xf0] }
 0x148   : > { %v1793_v30 = vadd.f32 %v3239_v38, %v1711_v3  ;;  %v1447_v60 = vadd.f32 %v1446_v28, %v3074_v24  ;;  %v1629_v2 = vpop.f32.mrf.mxu0  ;;  %v2576_v28 = vld [vmem:[%s2898_s23 + $0x1c4] sm:$0xf]  ;;  %v2306_v8 = vor.u32 %v2588_v55, %v2305_v14  ;;  %v2325_v55 = vld [vmem:[%s2898_s23 + $0x238] sm:$0xf] }
 0x149   : > { %v1715_v32 = vpop.f32.mrf.mxu1 }
 0x14a   : > { %1825 = vst.msk [vmem:[%s3247_s26 + $0x8] sm:$0xff] %vm1294_vm3, %v1793_v30  ;;  %v1536_v49 = vadd.f32 %v3202_v26, %v1447_v60  ;;  %v2267_v30 = vld [vmem:[%s2898_s23 + $0x1d4] sm:$0xf0] }
 0x14b   : > { %1668 = vmatmul.bf16.gmra.mxu0 %v2250_v35  ;;  %1589 = vmatmul.bf16.gmra.mxu3 %v2286_v45  ;;  %v2270_v46 = vor.u32 %v2576_v28, %v2267_v30  ;;  %v2581_v30 = vld [vmem:[%s2898_s23 + $0x1ec] sm:$0xf] }
 0x14c   : > { %v1625_v22 = vadd.f32 %v1624_v16, %v1536_v49 }
 0x14e   : > { %v1714_v24 = vadd.f32 %v1713_v62, %v1625_v22  ;;  %v3275_v3 = vpop.f32.mrf.mxu3 }
 0x14f   : > { %v1448_v18 = vpop.f32.mrf.mxu2 }
 0x150   : > { %v1794_v26 = vadd.f32 %v3239_v38, %v1714_v24  ;;  %v1449_v63 = vadd.f32 %v1448_v18, %v3081_v33  ;;  %v1631_v16 = vpop.f32.mrf.mxu0  ;;  %v2575_v24 = vld [vmem:[%s2898_s23 + $0x1bc] sm:$0xf]  ;;  %v2259_v18 = vld [vmem:[%s2898_s23 + $0x1cc] sm:$0xf0] }
 0x151   : > { %v1718_v10 = vpop.f32.mrf.mxu1 }
 0x152   : > { %1826 = vst.msk [vmem:[%s3247_s26 + $0x10] sm:$0xff] %vm1294_vm3, %v1794_v26  ;;  %v1538_v27 = vadd.f32 %v3211_v13, %v1449_v63 }
 0x154   : > { %2509 = vmatmul.msk.bf16.gmra.mxu1 %vm1294_vm3, %v2254_v61  ;;  %v1627_v62 = vadd.f32 %v1626_v4, %v1538_v27  ;;  %1490 = vmatmul.bf16.gmra.mxu2 %v2242_v41  ;;  %v2262_v41 = vor.u32 %v2575_v24, %v2259_v18  ;;  %v2580_v24 = vld [vmem:[%s2898_s23 + $0x1e4] sm:$0xf]  ;;  %v2279_v18 = vld [vmem:[%s2898_s23 + $0x1f4] sm:$0xf0] }
 0x156   : > { %v1716_v33 = vadd.f32 %v1715_v32, %v1627_v62  ;;  %v3285_v22 = vpop.f32.mrf.mxu3  ;;  %v2273_v32 = vld [vmem:[%s2898_s23 + $0x1c8] sm:$0xf] }
 0x157   : > { %v1451_v60 = vpop.f32.mrf.mxu2  ;;  %v2274_v26 = vor.u32 %v2579_v56, %v2273_v32  ;;  %v2584_v56 = vld [vmem:[%s2898_s23 + $0x200] sm:$0xf0] }
 0x158   : > { %v1795_v35 = vadd.f32 %v3239_v38, %v1716_v33  ;;  %v1452_v13 = vadd.f32 %v1451_v60, %v3094_v48  ;;  %v1634_v47 = vpop.f32.mrf.mxu0  ;;  %v2287_v33 = vld [vmem:[%s2898_s23 + $0x1fc] sm:$0xf0] }
 0x159   : > { %v1720_v49 = vpop.f32.mrf.mxu1 }
 0x15a   : > { %1827 = vst.msk [vmem:[%s3247_s26 + $0x18] sm:$0xff] %vm1294_vm3, %v1795_v35  ;;  %v1541_v4 = vadd.f32 %v3222_v1, %v1452_v13 }
 0x15b   : > { %1673 = vmatmul.bf16.gmra.mxu0 %v2270_v46  ;;  %1594 = vmatmul.bf16.gmra.mxu3 %v2306_v8  ;;  %v2290_v46 = vor.u32 %v2581_v30, %v2287_v33 }
 0x15c   : > { %v1630_v45 = vadd.f32 %v1629_v2, %v1541_v4 }
 0x15e   : > { %v1719_v48 = vadd.f32 %v1718_v10, %v1630_v45  ;;  %v3298_v28 = vpop.f32.mrf.mxu3  ;;  %v2593_v45 = vld [vmem:[%s2898_s23 + $0x248] sm:$0xf0] }
 0x15f   : > { %v1453_v61 = vpop.f32.mrf.mxu2  ;;  %v2326_v8 = vor.u32 %v2593_v45, %v2325_v55  ;;  %v2589_v45 = vld [vmem:[%s2898_s23 + $0x228] sm:$0xf0] }
 0x160   : > { %v1796_v1 = vadd.f32 %v3239_v38, %v1719_v48  ;;  %v1454_v63 = vadd.f32 %v1453_v61, %v3101_v57  ;;  %v1636_v2 = vpop.f32.mrf.mxu0 }
 0x161   : > { %v1723_v27 = vpop.f32.mrf.mxu1 }
 0x162   : > { %1828 = vst.msk [vmem:[%s3247_s26 + $0x20] sm:$0xff] %vm1294_vm3, %v1796_v1  ;;  %v1543_v62 = vadd.f32 %v3230_v52, %v1454_v63  ;;  %v2282_v1 = vor.u32 %v2580_v24, %v2279_v18 }
 0x164   : > { %2510 = vmatmul.msk.bf16.gmra.mxu1 %vm1294_vm3, %v2274_v26  ;;  %v1632_v10 = vadd.f32 %v1631_v16, %v1543_v62  ;;  %1495 = vmatmul.bf16.gmra.mxu2 %v2262_v41 }
 0x166   : > { %v1721_v57 = vadd.f32 %v1720_v49, %v1632_v10  ;;  %v3308_v14 = vpop.f32.mrf.mxu3  ;;  %v2293_v49 = vld [vmem:[%s2898_s23 + $0x1f0] sm:$0xf]  ;;  %v2586_v10 = vld [vmem:[%s2898_s23 + $0x214] sm:$0xf] }
 0x167   : > { %v1456_v60 = vpop.f32.mrf.mxu2  ;;  %v2294_v61 = vor.u32 %v2584_v56, %v2293_v49  ;;  %v2585_v49 = vld [vmem:[%s2898_s23 + $0x20c] sm:$0xf]  ;;  %v2299_v56 = vld [vmem:[%s2898_s23 + $0x21c] sm:$0xf0] }
 0x168   : > { %v1797_v35 = vadd.f32 %v3239_v38, %v1721_v57  ;;  %v1457_v52 = vadd.f32 %v1456_v60, %v3114_v12  ;;  %v1639_v4 = vpop.f32.mrf.mxu0 }
 0x169   : > { %v1725_v13 = vpop.f32.mrf.mxu1 }
 0x16a   : > { %1829 = vst.msk [vmem:[%s3247_s26 + $0x28] sm:$0xff] %vm1294_vm3, %v1797_v35  ;;  %v1546_v16 = vadd.f32 %v3252_v9, %v1457_v52 }
 0x16b   : > { %1678 = vmatmul.bf16.gmra.mxu0 %v2290_v46  ;;  %1599 = vmatmul.bf16.gmra.mxu3 %v2326_v8  ;;  %v2345_v46 = vld [vmem:[%s2898_s23 + $0x260] sm:$0xf] }
 0x16c   : > { %v1635_v32 = vadd.f32 %v1634_v47, %v1546_v16  ;;  %v2598_v16 = vld [vmem:[%s2898_s23 + $0x270] sm:$0xf0] }
 0x16e   : > { %v1724_v12 = vadd.f32 %v1723_v27, %v1635_v32  ;;  %v3322_v27 = vpop.f32.mrf.mxu3  ;;  %v2346_v32 = vor.u32 %v2598_v16, %v2345_v46 }
 0x16f   : > { %v1458_v48 = vpop.f32.mrf.mxu2 }
 0x170   : > { %v1798_v9 = vadd.f32 %v3239_v38, %v1724_v12  ;;  %v1459_v26 = vadd.f32 %v1458_v48, %v3121_v21  ;;  %v1641_v47 = vpop.f32.mrf.mxu0  ;;  %v2307_v21 = vld [vmem:[%s2898_s23 + $0x224] sm:$0xf0] }
 0x171   : > { %v1728_v63 = vpop.f32.mrf.mxu1  ;;  %v2310_v35 = vor.u32 %v2586_v10, %v2307_v21 }
 0x172   : > { %1830 = vst.msk [vmem:[%s3247_s26 + $0x30] sm:$0xff] %vm1294_vm3, %v1798_v9  ;;  %v1548_v41 = vadd.f32 %v3262_v39, %v1459_v26 }
 0x174   : > { %2511 = vmatmul.msk.bf16.gmra.mxu1 %vm1294_vm3, %v2294_v61  ;;  %v1637_v62 = vadd.f32 %v1636_v2, %v1548_v41  ;;  %1500 = vmatmul.bf16.gmra.mxu2 %v2282_v1  ;;  %v2591_v1 = vld [vmem:[%s2898_s23 + $0x23c] sm:$0xf] }
 0x176   : > { %v1726_v30 = vadd.f32 %v1725_v13, %v1637_v62  ;;  %v2313_v13 = vld [vmem:[%s2898_s23 + $0x218] sm:$0xf]  ;;  %v3337_v8 = vpop.f32.mrf.mxu3 }
 0x177   : > { %v1461_v33 = vpop.f32.mrf.mxu2  ;;  %v2314_v18 = vor.u32 %v2589_v45, %v2313_v13 }
 0x178   : > { %v1799_v57 = vadd.f32 %v3239_v38, %v1726_v30  ;;  %v1462_v39 = vadd.f32 %v1461_v33, %v3134_v40  ;;  %v1644_v52 = vpop.f32.mrf.mxu0 }
 0x179   : > { %v1730_v60 = vpop.f32.mrf.mxu1 }
 0x17a   : > { %1831 = vst.msk [vmem:[%s3247_s26 + $0x38] sm:$0xff] %vm1294_vm3, %v1799_v57  ;;  %v1551_v2 = vadd.f32 %v3275_v3, %v1462_v39  ;;  %v2333_v39 = vld [vmem:[%s2898_s23 + $0x240] sm:$0xf] }
 0x17b   : > { %1683 = vmatmul.bf16.gmra.mxu0 %v2310_v35  ;;  %1604 = vmatmul.bf16.gmra.mxu3 %v2346_v32  ;;  %v2594_v35 = vld [vmem:[%s2898_s23 + $0x250] sm:$0xf0] }
 0x17c   : > { %v1640_v55 = vadd.f32 %v1639_v4, %v1551_v2  ;;  %v2302_v4 = vor.u32 %v2585_v49, %v2299_v56  ;;  %v2319_v2 = vld [vmem:[%s2898_s23 + $0x244] sm:$0xf0] }
 0x17e   : > { %v1729_v40 = vadd.f32 %v1728_v63, %v1640_v55  ;;  %v2327_v63 = vld [vmem:[%s2898_s23 + $0x24c] sm:$0xf0]  ;;  %v3347_v62 = vpop.f32.mrf.mxu3  ;;  %v2334_v55 = vor.u32 %v2594_v35, %v2333_v39 }
 0x17f   : > { %v1463_v24 = vpop.f32.mrf.mxu2 }
 0x180   : > { %v1800_v3 = vadd.f32 %v3239_v38, %v1729_v40  ;;  %v1464_v12 = vadd.f32 %v1463_v24, %v3141_v51  ;;  %v1646_v61 = vpop.f32.mrf.mxu0  ;;  %v2596_v40 = vld [vmem:[%s2898_s23 + $0x264] sm:$0xf]  ;;  %v2347_v24 = vld [vmem:[%s2898_s23 + $0x274] sm:$0xf0] }
 0x181   : > { %v1733_v48 = vpop.f32.mrf.mxu1 }
 0x182   : > { %1832 = vst.msk [vmem:[%s3247_s26 + $0x40] sm:$0xff] %vm1294_vm3, %v1800_v3  ;;  %v1553_v9 = vadd.f32 %v3285_v22, %v1464_v12  ;;  %v2330_v22 = vor.u32 %v2591_v1, %v2327_v63  ;;  %v2353_v1 = vld [vmem:[%s2898_s23 + $0x268] sm:$0xf]  ;;  %v2599_v63 = vld [vmem:[%s2898_s23 + $0x278] sm:$0xf0] }
 0x184   : > { %2512 = vmatmul.msk.bf16.gmra.mxu1 %vm1294_vm3, %v2314_v18  ;;  %v1642_v26 = vadd.f32 %v1641_v47, %v1553_v9  ;;  %1505 = vmatmul.bf16.gmra.mxu2 %v2302_v4 }
 0x186   : > { %v1731_v41 = vadd.f32 %v1730_v60, %v1642_v26  ;;  %v2590_v60 = vld [vmem:[%s2898_s23 + $0x234] sm:$0xf] }
 0x187   : > { %v1466_v51 = vpop.f32.mrf.mxu2  ;;  %v2322_v45 = vor.u32 %v2590_v60, %v2319_v2 }
 0x188   : > { %v1801_v10 = vadd.f32 %v3239_v38, %v1731_v41  ;;  %v1467_v21 = vadd.f32 %v1466_v51, %v3154_v7  ;;  %v1649_v33 = vpop.f32.mrf.mxu0  ;;  %v2595_v41 = vld [vmem:[%s2898_s23 + $0x25c] sm:$0xf]  ;;  %v2339_v51 = vld [vmem:[%s2898_s23 + $0x26c] sm:$0xf0]  ;;  %s2652_s23 = sshll.u32 %s2824_s22, 8 }
 0x189   : > { %v1735_v30 = vpop.f32.mrf.mxu1  ;;  %s1868_s7 = scalar_lea.hbm %s3498_s5, %s2652_s23 }
 0x18a   : > { %1833 = vst.msk [vmem:[%s3247_s26 + $0x48] sm:$0xff] %vm1294_vm3, %v1801_v10  ;;  %v1556_v47 = vadd.f32 %v3298_v28, %v1467_v21  ;;  %v1567_v28 = vpop.f32.mrf.mxu3  ;;  %s1871_s22 = sshll.u32 %s1868_s7, 4  ;;  %s1872_s22 = int_to_ptr.hbm [resolvable:$true] %s1871_s22 }
 0x18b   : > { %1688 = vmatmul.bf16.gmra.mxu0 %v2330_v22  ;;  %s2720_s11 = sshra.s32 %s1872_s22, 4  ;;  %s2721_s11 = int_to_ptr.hbm [resolvable:$true] %s2720_s11 }
 0x18c   : > { %v1645_v57 = vadd.f32 %v1644_v52, %v1556_v47  ;;  %v2342_v47 = vor.u32 %v2595_v41, %v2339_v51  ;;  %s2722_s12 = scalar_lea.hbm %s2721_s11, 256  ;;  %p2727_p0 = scmp.lt.s32.totalorder %s2721_s11, %s3498_s5 }
 0x18d   : > { %p2723_p11 = scmp.ne.s32.totalorder %s2721_s11, %s2722_s12  ;;  %p2728_p1 = scmp.lt.s32.totalorder %s2726_s15, %s2722_s12 }
 0x18e   : > { %v1734_v46 = vadd.f32 %v1733_v48, %v1645_v57  ;;  %v2350_v48 = vor.u32 %v2596_v40, %v2347_v24 }
 0x18f   : > { %v1468_v16 = vpop.f32.mrf.mxu2  ;;  %p2724_p12 = pnand %p2723_p11, %p2841_p5  ;;  %p2729_p2 = por %p2728_p1, %p2727_p0 }
 0x190   : > { %v1802_v7 = vadd.f32 %v3239_v38, %v1734_v46  ;;  %v1469_v13 = vadd.f32 %v1468_v16, %v3161_v23  ;;  %v1651_v49 = vpop.f32.mrf.mxu0 }
 0x191   : > { %v1738_v32 = vpop.f32.mrf.mxu1  ;;  %p2725_p13 = pneg %p2724_p12 }
 0x192   : > { %1834 = vst.msk [vmem:[%s3247_s26 + $0x50] sm:$0xff] %vm1294_vm3, %v1802_v7  ;;  %v1558_v52 = vadd.f32 %v3308_v14, %v1469_v13 }
 0x193   : > { %p2730_p3 = pnand %p2729_p2, %p2725_p13 }
 0x194   : > { %2513 = vmatmul.msk.bf16.gmra.mxu1 %vm1294_vm3, %v2334_v55  ;;  %v1647_v56 = vadd.f32 %v1646_v61, %v1558_v52  ;;  %1510 = vmatmul.bf16.gmra.mxu2 %v2322_v45  ;;  %v1570_v61 = vpop.f32.mrf.mxu3 }
 0x196   : > { %v1736_v23 = vadd.f32 %v1735_v30, %v1647_v56  ;;  %v2354_v30 = vor.u32 %v2599_v63, %v2353_v1 }
 0x197   : > { %v1471_v18 = vpop.f32.mrf.mxu2 }
 0x198   : > { %v1803_v3 = vadd.f32 %v3239_v38, %v1736_v23  ;;  %v1472_v12 = vadd.f32 %v1471_v18, %v3174_v43  ;;  %v1654_v9 = vpop.f32.mrf.mxu0  ;;  %v1393_v23 = vadd.f32 %v3060_v6, %v3183_v59 }
 0x199   : > { %v1740_v4 = vpop.f32.mrf.mxu1 }
 0x19a   : > { %1835 = vst.msk [vmem:[%s3247_s26 + $0x58] sm:$0xff] %vm1294_vm3, %v1803_v3  ;;  %v1561_v14 = vadd.f32 %v3322_v27, %v1472_v12 }
 0x19b   : > { %1693 = vmatmul.bf16.gmra.mxu0 %v2350_v48 }
 0x19c   : > { %v1650_v26 = vadd.f32 %v1649_v33, %v1561_v14  ;;  %v1572_v35 = vpop.f32.mrf.mxu3 }
 0x19e   : > { %v1739_v10 = vadd.f32 %v1738_v32, %v1650_v26 }
 0x19f   : > { %v1473_v21 = vpop.f32.mrf.mxu2 }
 0x1a0   : > { %v1804_v43 = vadd.f32 %v3239_v38, %v1739_v10  ;;  %v1474_v22 = vadd.f32 %v1473_v21, %v3185_v50  ;;  %v1656_v39 = vpop.f32.mrf.mxu0 }
 0x1a1   : > { %v1743_v57 = vpop.f32.mrf.mxu1 }
 0x1a2   : > { %1836 = vst.msk [vmem:[%s3247_s26 + $0x60] sm:$0xff] %vm1294_vm3, %v1804_v43  ;;  %v1563_v27 = vadd.f32 %v3337_v8, %v1474_v22 }
 0x1a4   : > { %2514 = vmatmul.msk.bf16.gmra.mxu1 %vm1294_vm3, %v2354_v30  ;;  %v1652_v33 = vadd.f32 %v1651_v49, %v1563_v27  ;;  %1515 = vmatmul.bf16.gmra.mxu2 %v2342_v47  ;;  %v1575_v32 = vpop.f32.mrf.mxu3 }
 0x1a6   : > { %v1741_v60 = vadd.f32 %v1740_v4, %v1652_v33 }
 0x1a7   : > { %v1476_v2 = vpop.f32.mrf.mxu2 }
 0x1a8   : > { %v1805_v46 = vadd.f32 %v3239_v38, %v1741_v60  ;;  %v1477_v50 = vadd.f32 %v1476_v2, %v3200_v20  ;;  %v1659_v55 = vpop.f32.mrf.mxu0 }
 0x1a9   : > { %v1745_v16 = vpop.f32.mrf.mxu1 }
 0x1aa   : > { %1837 = vst.msk [vmem:[%s3247_s26 + $0x68] sm:$0xff] %vm1294_vm3, %v1805_v46  ;;  %v1566_v7 = vadd.f32 %v3347_v62, %v1477_v50 }
 0x1ac   : > { %v1655_v13 = vadd.f32 %v1654_v9, %v1566_v7  ;;  %v1577_v9 = vpop.f32.mrf.mxu3 }
 0x1ae   : > { %v1744_v8 = vadd.f32 %v1743_v57, %v1655_v13 }
 0x1af   : > { %v1478_v45 = vpop.f32.mrf.mxu2 }
 0x1b0   : > { %v1806_v49 = vadd.f32 %v3239_v38, %v1744_v8  ;;  %v1479_v52 = vadd.f32 %v1478_v45, %v3209_v25  ;;  %v1661_v40 = vpop.f32.mrf.mxu0 }
 0x1b1   : > { %v1748_v56 = vpop.f32.mrf.mxu1 }
 0x1b2   : > { %1838 = vst.msk [vmem:[%s3247_s26 + $0x70] sm:$0xff] %vm1294_vm3, %v1806_v49  ;;  %v1568_v20 = vadd.f32 %v1567_v28, %v1479_v52  ;;  %v1395_v28 = vadd.f32 %v3072_v19, %v3198_v17 }
 0x1b4   : > { %v1657_v24 = vadd.f32 %v1656_v39, %v1568_v20  ;;  %v1580_v10 = vpop.f32.mrf.mxu3 }
 0x1b6   : > { %v1746_v18 = vadd.f32 %v1745_v16, %v1657_v24 }
 0x1b7   : > { %v1481_v62 = vpop.f32.mrf.mxu2 }
 0x1b8   : > { %v1807_v3 = vadd.f32 %v3239_v38, %v1746_v18  ;;  %v1482_v12 = vadd.f32 %v1481_v62, %v1393_v23  ;;  %v1664_v48 = vpop.f32.mrf.mxu0 }
 0x1b9   : > { %v1750_v4 = vpop.f32.mrf.mxu1 }
 0x1ba   : > { %1839 = vst.msk [vmem:[%s3247_s26 + $0x78] sm:$0xff] %vm1294_vm3, %v1807_v3  ;;  %v1571_v25 = vadd.f32 %v1570_v61, %v1482_v12 }
 0x1bc   : > { %v1660_v14 = vadd.f32 %v1659_v55, %v1571_v25  ;;  %v1582_v39 = vpop.f32.mrf.mxu3 }
 0x1be   : > { %v1749_v26 = vadd.f32 %v1748_v56, %v1660_v14 }
 0x1bf   : > { %v1483_v1 = vpop.f32.mrf.mxu2 }
 0x1c0   : > { %v1808_v6 = vadd.f32 %v3239_v38, %v1749_v26  ;;  %v1484_v59 = vadd.f32 %v1483_v1, %v1395_v28  ;;  %v1666_v41 = vpop.f32.mrf.mxu0 }
 0x1c1   : > { %v1753_v63 = vpop.f32.mrf.mxu1 }
 0x1c2   : > { %1840 = vst.msk [vmem:[%s3247_s26 + $0x80] sm:$0xff] %vm1294_vm3, %v1808_v6  ;;  %v1573_v51 = vadd.f32 %v1572_v35, %v1484_v59 }
 0x1c4   : > { %v1662_v21 = vadd.f32 %v1661_v40, %v1573_v51  ;;  %v1585_v7 = vpop.f32.mrf.mxu3 }
 0x1c6   : > { %v1751_v30 = vadd.f32 %v1750_v4, %v1662_v21 }
 0x1c7   : > { %v1486_v61 = vpop.f32.mrf.mxu2 }
 0x1c8   : > { %v1809_v43 = vadd.f32 %v3239_v38, %v1751_v30  ;;  %v1487_v19 = vadd.f32 %v1486_v61, %v3079_v29  ;;  %v1669_v22 = vpop.f32.mrf.mxu0 }
 0x1c9   : > { %v1755_v17 = vpop.f32.mrf.mxu1 }
 0x1ca   : > { %1841 = vst.msk [vmem:[%s3247_s26 + $0x88] sm:$0xff] %vm1294_vm3, %v1809_v43  ;;  %v1576_v47 = vadd.f32 %v1575_v32, %v1487_v19 }
 0x1cc   : > { %v1665_v57 = vadd.f32 %v1664_v48, %v1576_v47  ;;  %v1587_v23 = vpop.f32.mrf.mxu3 }
 0x1ce   : > { %v1754_v27 = vadd.f32 %v1753_v63, %v1665_v57 }
 0x1cf   : > { %v1488_v33 = vpop.f32.mrf.mxu2 }
 0x1d0   : > { %v1810_v35 = vadd.f32 %v3239_v38, %v1754_v27  ;;  %v1489_v60 = vadd.f32 %v1488_v33, %v3092_v44  ;;  %v1671_v46 = vpop.f32.mrf.mxu0 }
 0x1d1   : > { %v1758_v2 = vpop.f32.mrf.mxu1 }
 0x1d2   : > { %1842 = vst.msk [vmem:[%s3247_s26 + $0x90] sm:$0xff] %vm1294_vm3, %v1810_v35  ;;  %v1578_v50 = vadd.f32 %v1577_v9, %v1489_v60 }
 0x1d4   : > { %v1667_v29 = vadd.f32 %v1666_v41, %v1578_v50  ;;  %v1590_v14 = vpop.f32.mrf.mxu3 }
 0x1d6   : > { %v1756_v16 = vadd.f32 %v1755_v17, %v1667_v29 }
 0x1d7   : > { %v1491_v55 = vpop.f32.mrf.mxu2 }
 0x1d8   : > { %v1811_v13 = vadd.f32 %v3239_v38, %v1756_v16  ;;  %v1492_v8 = vadd.f32 %v1491_v55, %v3099_v53  ;;  %v1674_v32 = vpop.f32.mrf.mxu0 }
 0x1d9   : > { %v1760_v45 = vpop.f32.mrf.mxu1 }
 0x1da   : > { %1843 = vst.msk [vmem:[%s3247_s26 + $0x98] sm:$0xff] %vm1294_vm3, %v1811_v13  ;;  %v1581_v49 = vadd.f32 %v1580_v10, %v1492_v8 }
 0x1dc   : > { %v1670_v44 = vadd.f32 %v1669_v22, %v1581_v49 }
 0x1de   : > { %v1759_v52 = vadd.f32 %v1758_v2, %v1670_v44 }
 0x1df   : > { %v1493_v56 = vpop.f32.mrf.mxu2 }
 0x1e0   : > { %v1812_v40 = vadd.f32 %v3239_v38, %v1759_v52  ;;  %v1494_v20 = vadd.f32 %v1493_v56, %v3112_v5  ;;  %v1676_v62 = vpop.f32.mrf.mxu0 }
 0x1e1   : > { %v1763_v24 = vpop.f32.mrf.mxu1 }
 0x1e2   : > { %1844 = vst.msk [vmem:[%s3247_s26 + $0xa0] sm:$0xff] %vm1294_vm3, %v1812_v40  ;;  %v1583_v18 = vadd.f32 %v1582_v39, %v1494_v20 }
 0x1e4   : > { %v1672_v53 = vadd.f32 %v1671_v46, %v1583_v18 }
 0x1e6   : > { %v1761_v3 = vadd.f32 %v1760_v45, %v1672_v53 }
 0x1e7   : > { %v1496_v12 = vpop.f32.mrf.mxu2 }
 0x1e8   : > { %v1813_v4 = vadd.f32 %v3239_v38, %v1761_v3  ;;  %v1497_v48 = vadd.f32 %v1496_v12, %v3119_v11  ;;  %v1679_v28 = vpop.f32.mrf.mxu0  ;;  %v1592_v11 = vpop.f32.mrf.mxu3 }
 0x1e9   : > { %v1765_v9 = vpop.f32.mrf.mxu1 }
 0x1ea   : > { %1845 = vst.msk [vmem:[%s3247_s26 + $0xa8] sm:$0xff] %vm1294_vm3, %v1813_v4  ;;  %v1586_v25 = vadd.f32 %v1585_v7, %v1497_v48 }
 0x1ec   : > { %v1675_v5 = vadd.f32 %v1674_v32, %v1586_v25 }
 0x1ee   : > { %v1764_v26 = vadd.f32 %v1763_v24, %v1675_v5 }
 0x1ef   : > { %v1498_v1 = vpop.f32.mrf.mxu2 }
 0x1f0   : > { %v1814_v6 = vadd.f32 %v3239_v38, %v1764_v26  ;;  %v1499_v59 = vadd.f32 %v1498_v1, %v3132_v36  ;;  %v1681_v30 = vpop.f32.mrf.mxu0  ;;  %v1595_v57 = vpop.f32.mrf.mxu3 }
 0x1f1   : > { %v1768_v63 = vpop.f32.mrf.mxu1 }
 0x1f2   : > { %1846 = vst.msk [vmem:[%s3247_s26 + $0xb0] sm:$0xff] %vm1294_vm3, %v1814_v6  ;;  %v1588_v41 = vadd.f32 %v1587_v23, %v1499_v59 }
 0x1f4   : > { %v1677_v51 = vadd.f32 %v1676_v62, %v1588_v41 }
 0x1f6   : > { %v1766_v10 = vadd.f32 %v1765_v9, %v1677_v51 }
 0x1f7   : > { %v1501_v21 = vpop.f32.mrf.mxu2 }
 0x1f8   : > { %v1815_v61 = vadd.f32 %v3239_v38, %v1766_v10  ;;  %v1502_v43 = vadd.f32 %v1501_v21, %v3139_v34  ;;  %v1684_v33 = vpop.f32.mrf.mxu0  ;;  %v1597_v16 = vpop.f32.mrf.mxu3 }
 0x1f9   : > { %v1770_v19 = vpop.f32.mrf.mxu1 }
 0x1fa   : > { %1847 = vst.msk [vmem:[%s3247_s26 + $0xb8] sm:$0xff] %vm1294_vm3, %v1815_v61  ;;  %v1591_v17 = vadd.f32 %v1590_v14, %v1502_v43 }
 0x1fc   : > { %v1680_v22 = vadd.f32 %v1679_v28, %v1591_v17 }
 0x1fe   : > { %v1769_v36 = vadd.f32 %v1768_v63, %v1680_v22 }
 0x1ff   : > { %v1503_v47 = vpop.f32.mrf.mxu2 }
 0x200   : > { %v1816_v39 = vadd.f32 %v3239_v38, %v1769_v36  ;;  %v1504_v27 = vadd.f32 %v1503_v47, %v3152_v0  ;;  %v1686_v7 = vpop.f32.mrf.mxu0  ;;  %v1600_v52 = vpop.f32.mrf.mxu3 }
 0x201   : > { %v1773_v60 = vpop.f32.mrf.mxu1 }
 0x202   : > { %1848 = vst.msk [vmem:[%s3247_s26 + $0xc0] sm:$0xff] %vm1294_vm3, %v1816_v39  ;;  %v1593_v35 = vadd.f32 %v1592_v11, %v1504_v27 }
 0x204   : > { %v1682_v34 = vadd.f32 %v1681_v30, %v1593_v35 }
 0x206   : > { %v1771_v2 = vadd.f32 %v1770_v19, %v1682_v34 }
 0x207   : > { %v1506_v46 = vpop.f32.mrf.mxu2 }
 0x208   : > { %v1817_v50 = vadd.f32 %v3239_v38, %v1771_v2  ;;  %v1507_v29 = vadd.f32 %v1506_v46, %v3159_v58  ;;  %v1689_v58 = vpop.f32.mrf.mxu0  ;;  %v1602_v3 = vpop.f32.mrf.mxu3 }
 0x209   : > { %v1775_v0 = vpop.f32.mrf.mxu1 }
 0x20a   : > { %1849 = vst.msk [vmem:[%s3247_s26 + $0xc8] sm:$0xff] %vm1294_vm3, %v1817_v50  ;;  %v1596_v55 = vadd.f32 %v1595_v57, %v1507_v29 }
 0x20c   : > { %v1685_v13 = vadd.f32 %v1684_v33, %v1596_v55 }
 0x20e   : > { %v1774_v8 = vadd.f32 %v1773_v60, %v1685_v13 }
 0x20f   : > { %v1508_v45 = vpop.f32.mrf.mxu2 }
 0x210   : > { %v1818_v32 = vadd.f32 %v3239_v38, %v1774_v8  ;;  %v1509_v49 = vadd.f32 %v1508_v45, %v3172_v37  ;;  %v1691_v12 = vpop.f32.mrf.mxu0  ;;  %v1605_v28 = vpop.f32.mrf.mxu3 }
 0x211   : > { %v1778_v20 = vpop.f32.mrf.mxu1 }
 0x212   : > { %1850 = vst.msk [vmem:[%s3247_s26 + $0xd0] sm:$0xff] %vm1294_vm3, %v1818_v32  ;;  %v1598_v44 = vadd.f32 %v1597_v16, %v1509_v49 }
 0x214   : > { %v1687_v56 = vadd.f32 %v1686_v7, %v1598_v44 }
 0x216   : > { %v1776_v40 = vadd.f32 %v1775_v0, %v1687_v56 }
 0x217   : > { %v1511_v24 = vpop.f32.mrf.mxu2 }
 0x218   : > { %v1819_v23 = vadd.f32 %v3239_v38, %v1776_v40  ;;  %v1512_v18 = vadd.f32 %v1511_v24, %v3181_v54  ;;  %v1694_v59 = vpop.f32.mrf.mxu0  ;;  %v1607_v30 = vpop.f32.mrf.mxu3 }
 0x219   : > { %v1780_v25 = vpop.f32.mrf.mxu1 }
 0x21a   : > { %1851 = vst.msk [vmem:[%s3247_s26 + $0xd8] sm:$0xff] %vm1294_vm3, %v1819_v23  ;;  %v1601_v62 = vadd.f32 %v1600_v52, %v1512_v18 }
 0x21c   : > { %v1690_v53 = vadd.f32 %v1689_v58, %v1601_v62 }
 0x21e   : > { %v1779_v37 = vadd.f32 %v1778_v20, %v1690_v53 }
 0x21f   : > { %v1513_v4 = vpop.f32.mrf.mxu2 }
 0x220   : > { %v1820_v48 = vadd.f32 %v3239_v38, %v1779_v37  ;;  %v1514_v9 = vadd.f32 %v1513_v4, %v3196_v15  ;;  %v1696_v61 = vpop.f32.mrf.mxu0 }
 0x221   : > { %v1783_v15 = vpop.f32.mrf.mxu1 }
 0x222   : > { %1852 = vst.msk [vmem:[%s3247_s26 + $0xe0] sm:$0xff] %vm1294_vm3, %v1820_v48  ;;  %v1603_v14 = vadd.f32 %v1602_v3, %v1514_v9 }
 0x224   : > { %v1692_v5 = vadd.f32 %v1691_v12, %v1603_v14 }
 0x226   : > { %v1781_v54 = vadd.f32 %v1780_v25, %v1692_v5 }
 0x227   : > { %v1516_v26 = vpop.f32.mrf.mxu2 }
 0x228   : > { %v1821_v1 = vadd.f32 %v3239_v38, %v1781_v54  ;;  %v1517_v6 = vadd.f32 %v1516_v26, %v3207_v31 }
 0x229   : > { %v1785_v19 = vpop.f32.mrf.mxu1 }
 0x22a   : > { %1853 = vst.msk [vmem:[%s3247_s26 + $0xe8] sm:$0xff] %vm1294_vm3, %v1821_v1  ;;  %v1606_v63 = vadd.f32 %v1605_v28, %v1517_v6 }
 0x22c   : > { %v1695_v41 = vadd.f32 %v1694_v59, %v1606_v63 }
 0x22e   : > { %v1784_v51 = vadd.f32 %v1783_v15, %v1695_v41 }
 0x22f   : > { %v1518_v11 = vpop.f32.mrf.mxu2 }
 0x230   : > { %v1822_v10 = vadd.f32 %v3239_v38, %v1784_v51  ;;  %v1519_v21 = vadd.f32 %v1518_v11, %v3220_v42 }
 0x232   : > { %1854 = vst.msk [vmem:[%s3247_s26 + $0xf0] sm:$0xff] %vm1294_vm3, %v1822_v10  ;;  %v1608_v31 = vadd.f32 %v1607_v30, %v1519_v21 }
 0x234   : > { %v1697_v43 = vadd.f32 %v1696_v61, %v1608_v31 }
 0x236   : > { %v1786_v17 = vadd.f32 %v1785_v19, %v1697_v43 }
 0x238   : > { %v1823_v22 = vadd.f32 %v3239_v38, %v1786_v17 }
 0x23a   : > { %1855 = vst.msk [vmem:[%s3247_s26 + $0xf8] sm:$0xff] %vm1294_vm3, %v1823_v22 }
 0x23b   : > { %2733 = shalt.err (!%p2730_p3)
}
 0x23c   : > { %s2771_s25 = smov 128   ;;  %s2772_s9 = smov 8  }
 0x23d   : > { %2663 = dma.vmem_to_hbm [thread:$0]  (%p2841_p5), %s1870_s8, 4096, %s1872_s22, %s1857_s10, %s2771_s25, %s2771_s25, %s2772_s9  }
 0x23e PF: > { %p2669_p4 = scmp.ge.s32.totalorder %s2768_s21, 2  ;;  %s1886_s26 = sand.u32 1, %s2756_s18  }
 0x23f   : > { %s1887_s23 = scalar_lea.sflag [#allocation3], %s1886_s26 }
 0x240   : > { %p2666_p7 = pnand %p2669_p4, %p2845_p6 }
 0x242   : > { %p2667_p8 = pneg %p2666_p7 }
 0x244   : > { %2751 = dma.done.wait (%p2667_p8), %s1887_s23, 4096  }
 0x245   : > { %2753 = vsyncadd (%p2667_p8), %s1887_s23, 4294963200  ;;  %p15_p9 = scmp.ge.s32.totalorder %s2828_s24, 4   ;;  %s3501_s18 = smov %s2760_s19 }
 0x246   : > { %s3502_s19 = smov %s2764_s20  ;;  %s3503_s20 = smov %s2839_s27 }
 0x247   : > { %s3504_s21 = smov %s2828_s24  ;;  %17 = sbr.rel (!%p15_p9) target bundleno = 3 (0x3), region = 78 }
 0x24c   :  { %1893 = vsyncpa [#allocation3], 1 }
 0x24d   :  { %1895 = vsyncpa [#allocation3 + $0x1], 1 }

</bundles_post_ra>
